<compile_context>
chip_gen: v6e
topology: v6e:2x2x1
jax: 0.10.0
libtpu: 0.0.40
codegen_flags: <defaults>
</compile_context>

<pallas_src>
import jax
import jax.numpy as jnp
from jax.experimental import pallas as pl
from jax.experimental.pallas import tpu as pltpu

HIDDEN = 512
TILE_B = 1024                      # batch tile (amortizes per-step overhead)
VMEM_LIMIT_BYTES = 48 * 1024 * 1024  # < v7x 64 MiB physical; overrides v5e 16 MiB default


def _round_up(x, m):
    return ((x + m - 1) // m) * m


def sac_critic_kernel(x_ref,
                      w1_ref, b1_ref,
                      w2a_ref, b2a_ref, w3a_ref, b3a_ref,
                      w2b_ref, b2b_ref, w3b_ref, b3b_ref,
                      q1_ref, q2_ref):
    # Streamed (TB, Din) bf16 batch tile (obs|act already concatenated).
    x = x_ref[...]

    # --- layer 1, both heads fused into a single MXU matmul -> (TB, 1024) f32.
    h1 = jnp.dot(x, w1_ref[...], preferred_element_type=jnp.float32)

    def head(col0, w2_ref, b2_ref, w3_ref, b3_ref, q_ref):
        # Bias + ReLU + bf16 cast on this head's 512-column half only
        # (keeps live intermediates small; one head finishes before the next).
        a = jnp.maximum(h1[:, col0:col0 + HIDDEN]
                        + b1_ref[:, col0:col0 + HIDDEN], 0.0).astype(jnp.bfloat16)
        # --- layer 2: full 512x512 MXU-sized matmul, f32 accumulation.
        h2 = jnp.maximum(
            jnp.dot(a, w2_ref[...], preferred_element_type=jnp.float32)
            + b2_ref[...], 0.0)
        # --- layer 3 (512 -> 1) off the MXU: broadcast multiply + lane reduce
        # on the VPU/XLU in f32 (an N=2 matmul would waste a full MXU tile).
        q = jnp.sum(h2 * w3_ref[...], axis=-1, keepdims=True) + b3_ref[...]
        q_ref[...] = q.astype(q_ref.dtype)

    head(0, w2a_ref, b2a_ref, w3a_ref, b3a_ref, q1_ref)
    head(HIDDEN, w2b_ref, b2b_ref, w3b_ref, b3b_ref, q2_ref)


def pack_sac_critic_params(params):
    """Repack/cast the weights ONCE (hoisted out of the per-call hot path).

    Returns the tuple consumed by sac_critic_forward.
    """
    w1a, b1a, w2a, b2a, w3a, b3a = params["net1"]
    w1b, b1b, w2b, b2b, w3b, b3b = params["net2"]
    # Fuse the two heads' first layers: (Din, 1024) weight / (1, 1024) bias.
    w1 = jnp.concatenate([w1a, w1b], axis=1).astype(jnp.bfloat16)
    b1 = jnp.concatenate([b1a, b1b], axis=1).astype(jnp.float32)
    return (
        w1, b1,
        w2a.astype(jnp.bfloat16), b2a.astype(jnp.float32),
        jnp.transpose(w3a).astype(jnp.float32), b3a.astype(jnp.float32),  # (1,512),(1,1)
        w2b.astype(jnp.bfloat16), b2b.astype(jnp.float32),
        jnp.transpose(w3b).astype(jnp.float32), b3b.astype(jnp.float32),
    )


@jax.jit
def sac_critic_forward(obses, actions, packed):
    """Forward pass of SACCritic.

    obses:   (batch, obs_dim)
    actions: (batch, act_dim)
    packed:  output of pack_sac_critic_params(params)
    returns: (q1s, q2s), each (batch, 1) f32
    """
    batch = obses.shape[0]
    obs_dim = obses.shape[1]
    act_dim = actions.shape[1]
    din = obs_dim + act_dim

    # Single streamed input: concat + bf16 cast once per call (tiny: din lanes,
    # and it lets layer 1 be one matmul instead of a K-split double pass).
    x = jnp.concatenate([obses, actions], axis=-1).astype(jnp.bfloat16)

    tb = min(TILE_B, _round_up(batch, 8))
    # v7x megacore: ensure >= 2 grid steps on the "parallel" batch axis when
    # there is enough work, so both TensorCores are used.
    if pl.cdiv(batch, tb) == 1 and batch >= 512:
        tb = _round_up(pl.cdiv(batch, 2), 8)
    grid = (pl.cdiv(batch, tb),)

    # Streamed operand: tiled along batch.
    x_spec = pl.BlockSpec((tb, din), lambda i: (i, 0))
    # Weights/biases: constant index_map -> DMA'd once, VMEM-resident.
    weight_specs = [pl.BlockSpec(w.shape, lambda i: (0, 0)) for w in packed]
    out_spec = pl.BlockSpec((tb, 1), lambda i: (i, 0))

    weight_bytes = sum(int(w.size) * w.dtype.itemsize for w in packed)
    cost = pl.CostEstimate(
        flops=batch * (2 * din * 2 * HIDDEN          # fused layer 1
                       + 2 * 2 * HIDDEN * HIDDEN     # two layer-2 matmuls
                       + 2 * 2 * HIDDEN),            # two layer-3 reductions
        transcendentals=0,
        bytes_accessed=weight_bytes + batch * din * 2 + batch * 2 * 4,
    )

    q1, q2 = pl.pallas_call(
        sac_critic_kernel,
        out_shape=(jax.ShapeDtypeStruct((batch, 1), jnp.float32),
                   jax.ShapeDtypeStruct((batch, 1), jnp.float32)),
        grid=grid,
        in_specs=[x_spec] + weight_specs,
        out_specs=(out_spec, out_spec),
        compiler_params=pltpu.CompilerParams(
            dimension_semantics=("parallel",),
            vmem_limit_bytes=VMEM_LIMIT_BYTES),
        cost_estimate=cost,
    )(x, *packed)
    return q1, q2


def _init_linear(key, fan_in, fan_out):
    """PyTorch nn.Linear-style init (U[-k, k], k=1/sqrt(fan_in)).

    Returns (W, b) with W shape (fan_in, fan_out), b shape (1, fan_out).
    """
    kw, kb = jax.random.split(key)
    bound = 1.0 / jnp.sqrt(jnp.float32(fan_in))
    w = jax.random.uniform(kw, (fan_in, fan_out), jnp.float32, -bound, bound)
    b = jax.random.uniform(kb, (1, fan_out), jnp.float32, -bound, bound)
    return w, b


def init_sac_critic_params(key, obs_dim, act_dim):
    in_dim = obs_dim + act_dim
    keys = jax.random.split(key, 6)

    def make_net(k3):
        w1, b1 = _init_linear(k3[0], in_dim, HIDDEN)
        w2, b2 = _init_linear(k3[1], HIDDEN, HIDDEN)
        w3, b3 = _init_linear(k3[2], HIDDEN, 1)
        return [w1, b1, w2, b2, w3, b3]

    return {"net1": make_net(keys[0:3]), "net2": make_net(keys[3:6])}


def _reference_forward(obses, actions, params, bf16_matmul):
    """Pure-JAX reference. bf16_matmul=True mirrors the kernel's dtypes:
    bf16 MXU matmuls with f32 accumulation for layers 1-2, f32 VPU layer 3."""
    x = jnp.concatenate([obses, actions], axis=-1)

    def net(p):
        w1, b1, w2, b2, w3, b3 = p
        if bf16_matmul:
            xb = x.astype(jnp.bfloat16)
            h = jnp.maximum(jnp.dot(xb, w1.astype(jnp.bfloat16),
                                    preferred_element_type=jnp.float32) + b1, 0.0)
            h = jnp.maximum(jnp.dot(h.astype(jnp.bfloat16), w2.astype(jnp.bfloat16),
                                    preferred_element_type=jnp.float32) + b2, 0.0)
            return jnp.sum(h * w3[:, 0], axis=-1, keepdims=True) + b3
        xf = x.astype(jnp.float32)
        h = jnp.maximum(jnp.dot(xf, w1) + b1, 0.0)
        h = jnp.maximum(jnp.dot(h, w2) + b2, 0.0)
        return jnp.dot(h, w3) + b3

    return net(params["net1"]), net(params["net2"])


if __name__ == "__main__":
    key = jax.random.PRNGKey(0)
    k_obs, k_act, k_par = jax.random.split(key, 3)

    batch, obs_dim, act_dim = 8, 16, 4
    obses = jax.random.normal(k_obs, (batch, obs_dim), jnp.float32)
    actions = jax.random.normal(k_act, (batch, act_dim), jnp.float32)
    params = init_sac_critic_params(k_par, obs_dim, act_dim)

    packed = pack_sac_critic_params(params)  # repack once, outside the hot path
    q1s, q2s = sac_critic_forward(obses, actions, packed)
    jax.block_until_ready((q1s, q2s))

    assert q1s.shape == (batch, 1) and q2s.shape == (batch, 1)

    # Tight check against a reference with the same bf16/f32 semantics.
    r1b, r2b = _reference_forward(obses, actions, params, bf16_matmul=True)
    assert jnp.allclose(q1s, r1b, atol=2e-3, rtol=2e-3)
    assert jnp.allclose(q2s, r2b, atol=2e-3, rtol=2e-3)

    # Looser sanity check against the full-f32 reference.
    r1, r2 = _reference_forward(obses, actions, params, bf16_matmul=False)
    assert jnp.allclose(q1s, r1, atol=1e-1, rtol=1e-1)
    assert jnp.allclose(q2s, r2, atol=1e-1, rtol=1e-1)

    print("KERNEL_OK")
</pallas_src>

<mosaic_0001>
module attributes {stable_mosaic.version = 11 : i64} {
  func.func @sac_critic_kernel(%arg0: i32, %arg1: memref<8x20xbf16, #tpu.memory_space<vmem>>, %arg2: memref<20x1024xbf16, #tpu.memory_space<vmem>>, %arg3: memref<1x1024xf32, #tpu.memory_space<vmem>>, %arg4: memref<512x512xbf16, #tpu.memory_space<vmem>>, %arg5: memref<1x512xf32, #tpu.memory_space<vmem>>, %arg6: memref<1x512xf32, #tpu.memory_space<vmem>>, %arg7: memref<1x1xf32, #tpu.memory_space<vmem>>, %arg8: memref<512x512xbf16, #tpu.memory_space<vmem>>, %arg9: memref<1x512xf32, #tpu.memory_space<vmem>>, %arg10: memref<1x512xf32, #tpu.memory_space<vmem>>, %arg11: memref<1x1xf32, #tpu.memory_space<vmem>>, %arg12: memref<8x1xf32, #tpu.memory_space<vmem>>, %arg13: memref<8x1xf32, #tpu.memory_space<vmem>>) attributes {dimension_semantics = [#tpu.dimension_semantics<parallel>], iteration_bounds = array<i64: 1>, scalar_prefetch = 0 : i64, scratch_operands = 0 : i64, tpu.core_type = #tpu.core_type<tc>, window_params = [{transform_indices = @transform_0, window_bounds = array<i64: 8, 20>}, {pipeline_mode = #tpu.pipeline_mode<synchronous>, transform_indices = @transform_1, window_bounds = array<i64: 20, 1024>}, {pipeline_mode = #tpu.pipeline_mode<synchronous>, transform_indices = @transform_2, window_bounds = array<i64: 1, 1024>}, {pipeline_mode = #tpu.pipeline_mode<synchronous>, transform_indices = @transform_3, window_bounds = array<i64: 512, 512>}, {pipeline_mode = #tpu.pipeline_mode<synchronous>, transform_indices = @transform_4, window_bounds = array<i64: 1, 512>}, {pipeline_mode = #tpu.pipeline_mode<synchronous>, transform_indices = @transform_5, window_bounds = array<i64: 1, 512>}, {pipeline_mode = #tpu.pipeline_mode<synchronous>, transform_indices = @transform_6, window_bounds = array<i64: 1, 1>}, {pipeline_mode = #tpu.pipeline_mode<synchronous>, transform_indices = @transform_7, window_bounds = array<i64: 512, 512>}, {pipeline_mode = #tpu.pipeline_mode<synchronous>, transform_indices = @transform_8, window_bounds = array<i64: 1, 512>}, {pipeline_mode = #tpu.pipeline_mode<synchronous>, transform_indices = @transform_9, window_bounds = array<i64: 1, 512>}, {pipeline_mode = #tpu.pipeline_mode<synchronous>, transform_indices = @transform_10, window_bounds = array<i64: 1, 1>}, {transform_indices = @transform_11, window_bounds = array<i64: 8, 1>}, {transform_indices = @transform_12, window_bounds = array<i64: 8, 1>}]} {
    %c0 = arith.constant 0 : index
    %c0_0 = arith.constant 0 : index
    %0 = vector.load %arg1[%c0, %c0_0] : memref<8x20xbf16, #tpu.memory_space<vmem>>, vector<8x20xbf16>
    %c0_1 = arith.constant 0 : index
    %c0_2 = arith.constant 0 : index
    %1 = vector.load %arg2[%c0_1, %c0_2] : memref<20x1024xbf16, #tpu.memory_space<vmem>>, vector<20x1024xbf16>
    %cst = arith.constant dense<0.000000e+00> : vector<8x1024xf32>
    %2 = tpu.matmul %0, %1, %cst {dimension_numbers = #tpu.dot_dimension_numbers<[1], [0], [0], [1], [0, 0, 1, 1], [], []>} : vector<8x20xbf16>, vector<20x1024xbf16>, vector<8x1024xf32> -> vector<8x1024xf32>
    %3 = vector.extract_strided_slice %2 {offsets = [0, 0], sizes = [8, 512], strides = [1, 1]} : vector<8x1024xf32> to vector<8x512xf32>
    %c0_3 = arith.constant 0 : index
    %c0_4 = arith.constant 0 : index
    %4 = vector.load %arg3[%c0_3, %c0_4] : memref<1x1024xf32, #tpu.memory_space<vmem>>, vector<1x512xf32>
    %5 = vector.broadcast %4 : vector<1x512xf32> to vector<8x512xf32>
    %6 = arith.addf %3, %5 : vector<8x512xf32>
    %cst_5 = arith.constant 0.000000e+00 : f32
    %7 = vector.broadcast %cst_5 : f32 to vector<8x512xf32>
    %8 = arith.maximumf %6, %7 : vector<8x512xf32>
    %9 = arith.truncf %8 : vector<8x512xf32> to vector<8x512xbf16>
    %c0_6 = arith.constant 0 : index
    %c0_7 = arith.constant 0 : index
    %10 = vector.load %arg4[%c0_6, %c0_7] : memref<512x512xbf16, #tpu.memory_space<vmem>>, vector<512x512xbf16>
    %cst_8 = arith.constant dense<0.000000e+00> : vector<8x512xf32>
    %11 = tpu.matmul %9, %10, %cst_8 {dimension_numbers = #tpu.dot_dimension_numbers<[1], [0], [0], [1], [0, 0, 1, 1], [], []>} : vector<8x512xbf16>, vector<512x512xbf16>, vector<8x512xf32> -> vector<8x512xf32>
    %c0_9 = arith.constant 0 : index
    %c0_10 = arith.constant 0 : index
    %12 = vector.load %arg5[%c0_9, %c0_10] : memref<1x512xf32, #tpu.memory_space<vmem>>, vector<1x512xf32>
    %13 = vector.broadcast %12 : vector<1x512xf32> to vector<8x512xf32>
    %14 = arith.addf %11, %13 : vector<8x512xf32>
    %cst_11 = arith.constant 0.000000e+00 : f32
    %15 = vector.broadcast %cst_11 : f32 to vector<8x512xf32>
    %16 = arith.maximumf %14, %15 : vector<8x512xf32>
    %c0_12 = arith.constant 0 : index
    %c0_13 = arith.constant 0 : index
    %17 = vector.load %arg6[%c0_12, %c0_13] : memref<1x512xf32, #tpu.memory_space<vmem>>, vector<1x512xf32>
    %18 = vector.broadcast %17 : vector<1x512xf32> to vector<8x512xf32>
    %19 = arith.mulf %16, %18 : vector<8x512xf32>
    %cst_14 = arith.constant dense<0.000000e+00> : vector<8xf32>
    %20 = vector.multi_reduction <add>, %19, %cst_14 [1] : vector<8x512xf32> to vector<8xf32>
    %21 = vector.shape_cast %20 : vector<8xf32> to vector<8x1xf32>
    %c0_15 = arith.constant 0 : index
    %c0_16 = arith.constant 0 : index
    %22 = vector.load %arg7[%c0_15, %c0_16] : memref<1x1xf32, #tpu.memory_space<vmem>>, vector<1x1xf32>
    %23 = vector.broadcast %22 : vector<1x1xf32> to vector<8x1xf32>
    %24 = arith.addf %21, %23 : vector<8x1xf32>
    %c0_17 = arith.constant 0 : index
    %c0_18 = arith.constant 0 : index
    %25 = vector.load %arg12[%c0_17, %c0_18] : memref<8x1xf32, #tpu.memory_space<vmem>>, vector<8x1xf32>
    tpu.vector_store %arg12[%c0_17, %c0_18], %24 {strides = array<i32>} : memref<8x1xf32, #tpu.memory_space<vmem>>, vector<8x1xf32>,
    %26 = vector.extract_strided_slice %2 {offsets = [0, 512], sizes = [8, 512], strides = [1, 1]} : vector<8x1024xf32> to vector<8x512xf32>
    %c0_19 = arith.constant 0 : index
    %c512 = arith.constant 512 : index
    %27 = vector.load %arg3[%c0_19, %c512] : memref<1x1024xf32, #tpu.memory_space<vmem>>, vector<1x512xf32>
    %28 = vector.broadcast %27 : vector<1x512xf32> to vector<8x512xf32>
    %29 = arith.addf %26, %28 : vector<8x512xf32>
    %cst_20 = arith.constant 0.000000e+00 : f32
    %30 = vector.broadcast %cst_20 : f32 to vector<8x512xf32>
    %31 = arith.maximumf %29, %30 : vector<8x512xf32>
    %32 = arith.truncf %31 : vector<8x512xf32> to vector<8x512xbf16>
    %c0_21 = arith.constant 0 : index
    %c0_22 = arith.constant 0 : index
    %33 = vector.load %arg8[%c0_21, %c0_22] : memref<512x512xbf16, #tpu.memory_space<vmem>>, vector<512x512xbf16>
    %cst_23 = arith.constant dense<0.000000e+00> : vector<8x512xf32>
    %34 = tpu.matmul %32, %33, %cst_23 {dimension_numbers = #tpu.dot_dimension_numbers<[1], [0], [0], [1], [0, 0, 1, 1], [], []>} : vector<8x512xbf16>, vector<512x512xbf16>, vector<8x512xf32> -> vector<8x512xf32>
    %c0_24 = arith.constant 0 : index
    %c0_25 = arith.constant 0 : index
    %35 = vector.load %arg9[%c0_24, %c0_25] : memref<1x512xf32, #tpu.memory_space<vmem>>, vector<1x512xf32>
    %36 = vector.broadcast %35 : vector<1x512xf32> to vector<8x512xf32>
    %37 = arith.addf %34, %36 : vector<8x512xf32>
    %cst_26 = arith.constant 0.000000e+00 : f32
    %38 = vector.broadcast %cst_26 : f32 to vector<8x512xf32>
    %39 = arith.maximumf %37, %38 : vector<8x512xf32>
    %c0_27 = arith.constant 0 : index
    %c0_28 = arith.constant 0 : index
    %40 = vector.load %arg10[%c0_27, %c0_28] : memref<1x512xf32, #tpu.memory_space<vmem>>, vector<1x512xf32>
    %41 = vector.broadcast %40 : vector<1x512xf32> to vector<8x512xf32>
    %42 = arith.mulf %39, %41 : vector<8x512xf32>
    %cst_29 = arith.constant dense<0.000000e+00> : vector<8xf32>
    %43 = vector.multi_reduction <add>, %42, %cst_29 [1] : vector<8x512xf32> to vector<8xf32>
    %44 = vector.shape_cast %43 : vector<8xf32> to vector<8x1xf32>
    %c0_30 = arith.constant 0 : index
    %c0_31 = arith.constant 0 : index
    %45 = vector.load %arg11[%c0_30, %c0_31] : memref<1x1xf32, #tpu.memory_space<vmem>>, vector<1x1xf32>
    %46 = vector.broadcast %45 : vector<1x1xf32> to vector<8x1xf32>
    %47 = arith.addf %44, %46 : vector<8x1xf32>
    %c0_32 = arith.constant 0 : index
    %c0_33 = arith.constant 0 : index
    %48 = vector.load %arg13[%c0_32, %c0_33] : memref<8x1xf32, #tpu.memory_space<vmem>>, vector<8x1xf32>
    tpu.vector_store %arg13[%c0_32, %c0_33], %47 {strides = array<i32>} : memref<8x1xf32, #tpu.memory_space<vmem>>, vector<8x1xf32>,
    return
  }
  func.func @transform_0(%arg0: i32) -> (i32, i32) {
    %c0_i32 = arith.constant 0 : i32
    %c0_i32_0 = arith.constant 0 : i32
    return %arg0, %c0_i32 : i32, i32
  }
  func.func @transform_1(%arg0: i32) -> (i32, i32) {
    %c0_i32 = arith.constant 0 : i32
    %c0_i32_0 = arith.constant 0 : i32
    %c0_i32_1 = arith.constant 0 : i32
    return %c0_i32, %c0_i32_0 : i32, i32
  }
  func.func @transform_2(%arg0: i32) -> (i32, i32) {
    %c0_i32 = arith.constant 0 : i32
    %c0_i32_0 = arith.constant 0 : i32
    %c0_i32_1 = arith.constant 0 : i32
    return %c0_i32, %c0_i32_0 : i32, i32
  }
  func.func @transform_3(%arg0: i32) -> (i32, i32) {
    %c0_i32 = arith.constant 0 : i32
    %c0_i32_0 = arith.constant 0 : i32
    %c0_i32_1 = arith.constant 0 : i32
    return %c0_i32, %c0_i32_0 : i32, i32
  }
  func.func @transform_4(%arg0: i32) -> (i32, i32) {
    %c0_i32 = arith.constant 0 : i32
    %c0_i32_0 = arith.constant 0 : i32
    %c0_i32_1 = arith.constant 0 : i32
    return %c0_i32, %c0_i32_0 : i32, i32
  }
  func.func @transform_5(%arg0: i32) -> (i32, i32) {
    %c0_i32 = arith.constant 0 : i32
    %c0_i32_0 = arith.constant 0 : i32
    %c0_i32_1 = arith.constant 0 : i32
    return %c0_i32, %c0_i32_0 : i32, i32
  }
  func.func @transform_6(%arg0: i32) -> (i32, i32) {
    %c0_i32 = arith.constant 0 : i32
    %c0_i32_0 = arith.constant 0 : i32
    %c0_i32_1 = arith.constant 0 : i32
    return %c0_i32, %c0_i32_0 : i32, i32
  }
  func.func @transform_7(%arg0: i32) -> (i32, i32) {
    %c0_i32 = arith.constant 0 : i32
    %c0_i32_0 = arith.constant 0 : i32
    %c0_i32_1 = arith.constant 0 : i32
    return %c0_i32, %c0_i32_0 : i32, i32
  }
  func.func @transform_8(%arg0: i32) -> (i32, i32) {
    %c0_i32 = arith.constant 0 : i32
    %c0_i32_0 = arith.constant 0 : i32
    %c0_i32_1 = arith.constant 0 : i32
    return %c0_i32, %c0_i32_0 : i32, i32
  }
  func.func @transform_9(%arg0: i32) -> (i32, i32) {
    %c0_i32 = arith.constant 0 : i32
    %c0_i32_0 = arith.constant 0 : i32
    %c0_i32_1 = arith.constant 0 : i32
    return %c0_i32, %c0_i32_0 : i32, i32
  }
  func.func @transform_10(%arg0: i32) -> (i32, i32) {
    %c0_i32 = arith.constant 0 : i32
    %c0_i32_0 = arith.constant 0 : i32
    %c0_i32_1 = arith.constant 0 : i32
    return %c0_i32, %c0_i32_0 : i32, i32
  }
  func.func @transform_11(%arg0: i32) -> (i32, i32) {
    %c0_i32 = arith.constant 0 : i32
    %c0_i32_0 = arith.constant 0 : i32
    return %arg0, %c0_i32 : i32, i32
  }
  func.func @transform_12(%arg0: i32) -> (i32, i32) {
    %c0_i32 = arith.constant 0 : i32
    %c0_i32_0 = arith.constant 0 : i32
    return %arg0, %c0_i32 : i32, i32
  }
}

</mosaic_0001>

<bundles_post_ra>
// kernel: sac_critic_forward.1
= control target key start
LH: loop header
LB: loop body
LE: loop exit
PB: predicated region body
PF: predicated region fallthrough
CT: control target
= control target key end

     0   :  { %s3374_s0 = inlined_call_operand.vmem [shape: bf16[8,20], index: 0, kind: input, shape index: {}]   ;;  %s3375_s1 = inlined_call_operand.hbm [shape: bf16[20,1024], index: 1, kind: input, shape index: {}]   ;;  %s3376_s2 = inlined_call_operand.vmem [shape: f32[1,1024], index: 2, kind: input, shape index: {}]   ;;  %s3377_s3 = inlined_call_operand.hbm [shape: bf16[512,512], index: 3, kind: input, shape index: {}]   ;;  %s3378_s4 = inlined_call_operand.vmem [shape: f32[1,512], index: 4, kind: input, shape index: {}]   ;;  %s3379_s5 = inlined_call_operand.vmem [shape: f32[1,512], index: 5, kind: input, shape index: {}]   ;;  %s3380_s6 = inlined_call_operand.<no memory space> [shape: f32[1,1], index: 6, kind: input, shape index: {}]   ;;  %s3381_s7 = inlined_call_operand.hbm [shape: bf16[512,512], index: 7, kind: input, shape index: {}]   ;;  %s3382_s8 = inlined_call_operand.vmem [shape: f32[1,512], index: 8, kind: input, shape index: {}]   ;;  %s3383_s9 = inlined_call_operand.vmem [shape: f32[1,512], index: 9, kind: input, shape index: {}]   ;;  %s3384_s11 = inlined_call_operand.vmem [shape: f32[8,1], index: 11, kind: output, shape index: {0}]   ;;  %s3385_s12 = inlined_call_operand.vmem [shape: f32[8,1], index: 12, kind: output, shape index: {1}]   ;;  %s3386_s10 = inlined_call_operand.<no memory space> [shape: f32[1,1], index: 10, kind: input, shape index: {}]  }
   0x1   :  { %v18_v0 = vstv %s3380_s6  ;;  %v20_v1 = vstv %s3386_s10 }
   0x2   :  { %19 = vst [vmem:[#allocation2] sm:$0x1] %v18_v0  ;;  %21 = vst [vmem:[#allocation3] sm:$0x1] %v20_v1 }
   0x3   :  { %22 = vsyncpa [#allocation5], 0 }
   0x4   :  { %23 = vsyncpa [#allocation7], 0  ;;  %s3173_s25 = smov [#allocation6]  }
   0x5   :  { %s45_s26 = sshll.u32 %s3173_s25, 4  ;;  %s46_s26 = int_to_ptr.vmem [resolvable:$true] %s45_s26 }
   0x6   :  { %s3117_s27 = scalar_lea.vmem %s46_s26, 16384  ;;  %p3122_p1 = scmp.lt.s32.totalorder %s46_s26, %s46_s26 }
   0x7   :  { %p3118_p0 = scmp.ne.s32.totalorder %s46_s26, %s3117_s27  ;;  %p3123_p2 = scmp.lt.s32.totalorder %s3117_s27, %s3117_s27 }
   0x9   :  { %p3124_p3 = por %p3123_p2, %p3122_p1 }
   0xb   :  { %p3125_p4 = pnand %p3124_p3, %p3118_p0 }
   0xd   :  { %3128 = shalt.err (!%p3125_p4)
}
   0xe   :  { %s3174_s28 = smov 256   ;;  %s3175_s6 = smov 16  }
   0xf   :  { %51 = dma.hbm_to_vmem [thread:$0]  %s3377_s3, 16384, %s46_s26, [#allocation7], %s3174_s28, %s3174_s28, %s3175_s6  }
  0x10   :  { %s3176_s10 = smov [#allocation4]  }
  0x11   :  { %s31_s13 = sshll.u32 %s3176_s10, 4  ;;  %s32_s13 = int_to_ptr.vmem [resolvable:$true] %s31_s13 }
  0x12   :  { %s3137_s14 = scalar_lea.vmem %s32_s13, 1536  ;;  %p3142_p6 = scmp.lt.s32.totalorder %s32_s13, %s32_s13 }
  0x13   :  { %p3138_p5 = scmp.ne.s32.totalorder %s32_s13, %s3137_s14  ;;  %p3143_p7 = scmp.lt.s32.totalorder %s3137_s14, %s3137_s14 }
  0x15   :  { %p3144_p8 = por %p3143_p7, %p3142_p6 }
  0x17   :  { %p3145_p9 = pnand %p3144_p8, %p3138_p5 }
  0x19   :  { %3148 = shalt.err (!%p3145_p9)
}
  0x1a   :  { %s3177_s15 = smov 512   ;;  %s3178_s16 = smov 32  }
  0x1b   :  { %37 = dma.hbm_to_vmem [thread:$0]  %s3375_s1, 1536, %s32_s13, [#allocation5], %s3177_s15, %s3177_s15, %s3178_s16  }
  0x1c   :  { %s3179_s19 = smov [#allocation8]  }
  0x1d   :  { %s63_s20 = sshll.u32 %s3179_s19, 4  ;;  %s64_s20 = int_to_ptr.vmem [resolvable:$true] %s63_s20 }
  0x1e   :  { %s3157_s3 = scalar_lea.vmem %s64_s20, 16384  ;;  %p3162_p11 = scmp.lt.s32.totalorder %s64_s20, %s64_s20 }
  0x1f   :  { %p3158_p10 = scmp.ne.s32.totalorder %s64_s20, %s3157_s3  ;;  %p3163_p12 = scmp.lt.s32.totalorder %s3157_s3, %s3157_s3 }
  0x21   :  { %p3164_p13 = por %p3163_p12, %p3162_p11 }
  0x23   :  { %p3165_p0 = pnand %p3164_p13, %p3158_p10 }
  0x25   :  { %3168 = shalt.err (!%p3165_p0)
}
  0x26   :  { %69 = dma.hbm_to_vmem [thread:$0]  %s3381_s7, 16384, %s64_s20, [#allocation7], %s3174_s28, %s3174_s28, %s3175_s6  }
  0x27   :  { %3169 = dma.done.wait [#allocation5], 1536  }
  0x28   :  { %3170 = vsyncadd [#allocation5], 4294965760 }
  0x29   :  { %3171 = dma.done.wait [#allocation7], 32768  }
  0x2a   :  { %3172 = vsyncadd [#allocation7], 4294934528  ;;  %v3180_v2 = vmov 0   ;;  %v95_v3 = vld [vmem:[#allocation4 + $0x40] sm:$0x33]  ;;  %vm163_vm0 = vcmask 1041408  }
  0x2b   :  { %220 = vmatprep.mubr.bf16.mxu0 %v3180_v2  ;;  %261 = vmatprep.mubr.bf16.mxu1 %v3180_v2  ;;  %v96_v4 = vld [vmem:[#allocation4 + $0x48] sm:$0x33]  ;;  %v87_v5 = vld [vmem:[#allocation4] sm:$0xff]  ;;  %v2436_v6 = vcombine.high %v95_v3, %v95_v3  ;;  %v2435_v8 = vcombine.low %v95_v3, %v95_v3  ;;  %v97_v15 = vld [vmem:[#allocation4 + $0x50] sm:$0x33]  ;;  %vm159_vm1 = vcmask 162816  }
  0x2c   :  { %v2438_v7 = vcombine.high %v96_v4, %v96_v4  ;;  %v2437_v9 = vcombine.low %v96_v4, %v96_v4  ;;  %v91_v10 = vld [vmem:[#allocation4 + $0x20] sm:$0xff]  ;;  %v88_v11 = vld [vmem:[#allocation4 + $0x8] sm:$0xff]  ;;  %v98_v16 = vld [vmem:[#allocation4 + $0x58] sm:$0x33]  ;;  %v2440_v21 = vcombine.high %v97_v15, %v97_v15  ;;  %v2439_v22 = vcombine.low %v97_v15, %v97_v15 }
  0x2d   :  { %v92_v12 = vld [vmem:[#allocation4 + $0x28] sm:$0xff]  ;;  %v2428_v13 = vcombine.high %v87_v5, %v91_v10  ;;  %2443 = vmatprep.subr.msk.bf16.mxu0 %vm163_vm0, %v2436_v6  ;;  %v165_v17 = vsel %vm163_vm0, %v2435_v8, 0  ;;  %v2427_v19 = vcombine.low %v87_v5, %v91_v10  ;;  %v2442_v23 = vcombine.high %v98_v16, %v98_v16  ;;  %v89_v25 = vld [vmem:[#allocation4 + $0x10] sm:$0xff]  ;;  %v90_v27 = vld [vmem:[#allocation4 + $0x18] sm:$0xff] }
  0x2e   :  { %v2430_v14 = vcombine.high %v88_v11, %v92_v12  ;;  %2445 = vmatprep.subr.msk.bf16.mxu1 %vm163_vm0, %v2438_v7  ;;  %v171_v18 = vsel %vm163_vm0, %v2437_v9, 0  ;;  %201 = vmatpush1.bf16.msra.mxu0 %v165_v17  ;;  %v2429_v20 = vcombine.low %v88_v11, %v92_v12  ;;  %v2441_v24 = vcombine.low %v98_v16, %v98_v16  ;;  %v93_v26 = vld [vmem:[#allocation4 + $0x30] sm:$0xff]  ;;  %v94_v28 = vld [vmem:[#allocation4 + $0x38] sm:$0xff] }
  0x2f   :  { %242 = vmatpush1.bf16.msra.mxu1 %v171_v18  ;;  %202 = vmatprep.subr.bf16.mxu0 %v2428_v13  ;;  %v86_v29 = vld [vmem:[%s3374_s0] sm:$0xf]  ;;  %v177_v30 = vsel %vm163_vm0, %v2439_v22, 0  ;;  %v2432_v32 = vcombine.high %v89_v25, %v93_v26  ;;  %v2434_v33 = vcombine.high %v90_v27, %v94_v28  ;;  %v2431_v34 = vcombine.low %v89_v25, %v93_v26  ;;  %v2727_v36 = vld [vmem:[#allocation6 + $0xe4] ss:$16 sps:$4 sm:$0xff]  }
  0x30   :  { %243 = vmatprep.subr.bf16.mxu1 %v2430_v14  ;;  %v183_v31 = vsel %vm163_vm0, %v2441_v24, 0  ;;  %v2433_v35 = vcombine.low %v90_v27, %v94_v28  ;;  %v2730_v37 = vld [vmem:[#allocation6 + $0x2e4] ss:$16 sps:$4 sm:$0xff]   ;;  %v2725_v38 = vld [vmem:[#allocation6 + $0xe0] ss:$16 sps:$4 sm:$0xff]   ;;  %vm1383_vm2 = vcmask 7168  }
  0x31   :  { %v2728_v39 = vld [vmem:[#allocation6 + $0x2e0] ss:$16 sps:$4 sm:$0xff]   ;;  %v2733_v40 = vld [vmem:[#allocation6 + $0xc4] ss:$16 sps:$4 sm:$0xff]  }
  0x32   :  { %203 = vmatpush1.bf16.msra.mxu0 %v2427_v19  ;;  %v2736_v41 = vld [vmem:[#allocation6 + $0x2c4] ss:$16 sps:$4 sm:$0xff]   ;;  %v2731_v42 = vld [vmem:[#allocation6 + $0xc0] ss:$16 sps:$4 sm:$0xff]  }
  0x33   :  { %244 = vmatpush1.bf16.msra.mxu1 %v2429_v20  ;;  %2447 = vmatprep.subr.msk.bf16.mxu0 %vm163_vm0, %v2440_v21  ;;  %v2734_v43 = vld [vmem:[#allocation6 + $0x2c0] ss:$16 sps:$4 sm:$0xff]   ;;  %v2739_v44 = vld [vmem:[#allocation6 + $0xa4] ss:$16 sps:$4 sm:$0xff]  }
  0x34   :  { %2449 = vmatprep.subr.msk.bf16.mxu1 %vm163_vm0, %v2442_v23  ;;  %v2742_v45 = vld [vmem:[#allocation6 + $0x2a4] ss:$16 sps:$4 sm:$0xff]   ;;  %v2737_v46 = vld [vmem:[#allocation6 + $0xa0] ss:$16 sps:$4 sm:$0xff]  }
  0x35   :  { %2444 = vmatmul.mubr.msk.bf16.vlgmr.msra.gmra.mxu0 %vm159_vm1, %v86_v29  ;;  %v2740_v47 = vld [vmem:[#allocation6 + $0x2a0] ss:$16 sps:$4 sm:$0xff]   ;;  %v2745_v48 = vld [vmem:[#allocation6 + $0x84] ss:$16 sps:$4 sm:$0xff]  }
  0x36   :  { %2446 = vmatmul.mubr.msk.bf16.vlgmr.msra.gmra.mxu1 %vm159_vm1, %v86_v29  ;;  %283 = vmatpush1.bf16.msra.mxu0 %v177_v30  ;;  %v2748_v49 = vld [vmem:[#allocation6 + $0x284] ss:$16 sps:$4 sm:$0xff]   ;;  %v2743_v50 = vld [vmem:[#allocation6 + $0x80] ss:$16 sps:$4 sm:$0xff]  }
  0x37   :  { %324 = vmatpush1.bf16.msra.mxu1 %v183_v31  ;;  %284 = vmatprep.subr.bf16.mxu0 %v2432_v32  ;;  %v2746_v51 = vld [vmem:[#allocation6 + $0x280] ss:$16 sps:$4 sm:$0xff]   ;;  %v2751_v52 = vld [vmem:[#allocation6 + $0x64] ss:$16 sps:$4 sm:$0xff]  }
  0x38   :  { %325 = vmatprep.subr.bf16.mxu1 %v2434_v33  ;;  %302 = vmatprep.mubr.bf16.mxu0 %v3180_v2  ;;  %v2754_v53 = vld [vmem:[#allocation6 + $0x264] ss:$16 sps:$4 sm:$0xff]   ;;  %v2749_v54 = vld [vmem:[#allocation6 + $0x60] ss:$16 sps:$4 sm:$0xff]  }
  0x39   :  { %343 = vmatprep.mubr.bf16.mxu1 %v3180_v2  ;;  %v2752_v55 = vld [vmem:[#allocation6 + $0x260] ss:$16 sps:$4 sm:$0xff]   ;;  %v2757_v56 = vld [vmem:[#allocation6 + $0x44] ss:$16 sps:$4 sm:$0xff]  }
  0x3a   :  { %285 = vmatpush1.bf16.msra.mxu0 %v2431_v34  ;;  %v2760_v57 = vld [vmem:[#allocation6 + $0x244] ss:$16 sps:$4 sm:$0xff]   ;;  %v2755_v58 = vld [vmem:[#allocation6 + $0x40] ss:$16 sps:$4 sm:$0xff]  }
  0x3b   :  { %326 = vmatpush1.bf16.msra.mxu1 %v2433_v35  ;;  %1176 = vmatprep.subr.bf16.mxu0 %v2727_v36  ;;  %v2758_v59 = vld [vmem:[#allocation6 + $0x240] ss:$16 sps:$4 sm:$0xff]   ;;  %v2763_v60 = vld [vmem:[#allocation6 + $0x24] ss:$16 sps:$4 sm:$0xff]   ;;  %v2823_v36 = vld [vmem:[#allocation6 + $0xec] ss:$16 sps:$4 sm:$0xff]  }
  0x3c   :  { %1217 = vmatprep.subr.bf16.mxu1 %v2730_v37  ;;  %v2766_v61 = vld [vmem:[#allocation6 + $0x224] ss:$16 sps:$4 sm:$0xff]   ;;  %v2761_v62 = vld [vmem:[#allocation6 + $0x20] ss:$16 sps:$4 sm:$0xff]   ;;  %v2826_v37 = vld [vmem:[#allocation6 + $0x2ec] ss:$16 sps:$4 sm:$0xff]  }
  0x3d   :  { %2448 = vmatmul.mubr.msk.bf16.vlgmr.msra.gmra.mxu0 %vm159_vm1, %v86_v29  ;;  %v2764_v63 = vld [vmem:[#allocation6 + $0x220] ss:$16 sps:$4 sm:$0xff]   ;;  %v2769_v0 = vld [vmem:[#allocation6 + $0x4] ss:$16 sps:$4 sm:$0xff]  }
  0x3e   :  { %2450 = vmatmul.mubr.msk.bf16.vlgmr.msra.gmra.mxu1 %vm159_vm1, %v86_v29  ;;  %1177 = vmatpush1.bf16.msra.mxu0 %v2725_v38  ;;  %v2772_v1 = vld [vmem:[#allocation6 + $0x204] ss:$16 sps:$4 sm:$0xff]   ;;  %v2767_v2 = vld [vmem:[#allocation6] ss:$16 sps:$4 sm:$0xff]   ;;  %v354_v38 = vlaneseq }
  0x3f   :  { %1218 = vmatpush1.bf16.msra.mxu1 %v2728_v39  ;;  %1178 = vmatprep.subr.bf16.mxu0 %v2733_v40  ;;  %v2770_v3 = vld [vmem:[#allocation6 + $0x200] ss:$16 sps:$4 sm:$0xff]   ;;  %v2775_v4 = vld [vmem:[#allocation6 + $0x1e4] ss:$16 sps:$4 sm:$0xff]  }
  0x40   :  { %1219 = vmatprep.subr.bf16.mxu1 %v2736_v41  ;;  %v2778_v5 = vld [vmem:[#allocation6 + $0x3e4] ss:$16 sps:$4 sm:$0xff]   ;;  %v2773_v6 = vld [vmem:[#allocation6 + $0x1e0] ss:$16 sps:$4 sm:$0xff]   ;;  %v355_v39 = vshrl.u32 %v354_v38, 7 }
  0x41   :  { %v2776_v7 = vld [vmem:[#allocation6 + $0x3e0] ss:$16 sps:$4 sm:$0xff]   ;;  %v2781_v8 = vld [vmem:[#allocation6 + $0x1c4] ss:$16 sps:$4 sm:$0xff]   ;;  %v2860_v38 = vld [vmem:[#allocation6 + $0x228] ss:$16 sps:$4 sm:$0xff]  }
  0x42   :  { %1179 = vmatpush1.bf16.msra.mxu0 %v2731_v42  ;;  %v2784_v9 = vld [vmem:[#allocation6 + $0x3c4] ss:$16 sps:$4 sm:$0xff]   ;;  %v2779_v10 = vld [vmem:[#allocation6 + $0x1c0] ss:$16 sps:$4 sm:$0xff]   ;;  %v3276_v40 = vsub.s32 0, %v355_v39  ;;  %v3278_v41 = vsub.s32 2, %v355_v39 }
  0x43   :  { %1220 = vmatpush1.bf16.msra.mxu1 %v2734_v43  ;;  %1180 = vmatprep.subr.bf16.mxu0 %v2739_v44  ;;  %v2782_v11 = vld [vmem:[#allocation6 + $0x3c0] ss:$16 sps:$4 sm:$0xff]   ;;  %v2787_v12 = vld [vmem:[#allocation6 + $0x1a4] ss:$16 sps:$4 sm:$0xff]   ;;  %v3283_v43 = vsub.s32 1, %v355_v39  ;;  %v3285_v44 = vsub.s32 3, %v355_v39 }
  0x44   :  { %1221 = vmatprep.subr.bf16.mxu1 %v2742_v45  ;;  %v2790_v13 = vld [vmem:[#allocation6 + $0x3a4] ss:$16 sps:$4 sm:$0xff]   ;;  %v2785_v14 = vld [vmem:[#allocation6 + $0x1a0] ss:$16 sps:$4 sm:$0xff]   ;;  %v2865_v39 = vld [vmem:[#allocation6 + $0xc] ss:$16 sps:$4 sm:$0xff]  }
  0x45   :  { %v2788_v15 = vld [vmem:[#allocation6 + $0x3a0] ss:$16 sps:$4 sm:$0xff]   ;;  %v2793_v16 = vld [vmem:[#allocation6 + $0x184] ss:$16 sps:$4 sm:$0xff]  }
  0x46   :  { %1181 = vmatpush1.bf16.msra.mxu0 %v2737_v46  ;;  %v2796_v17 = vld [vmem:[#allocation6 + $0x384] ss:$16 sps:$4 sm:$0xff]   ;;  %v2791_v18 = vld [vmem:[#allocation6 + $0x180] ss:$16 sps:$4 sm:$0xff]  }
  0x47   :  { %1222 = vmatpush1.bf16.msra.mxu1 %v2740_v47  ;;  %1182 = vmatprep.subr.bf16.mxu0 %v2745_v48  ;;  %v2794_v19 = vld [vmem:[#allocation6 + $0x380] ss:$16 sps:$4 sm:$0xff]   ;;  %v2799_v20 = vld [vmem:[#allocation6 + $0x164] ss:$16 sps:$4 sm:$0xff]  }
  0x48   :  { %1223 = vmatprep.subr.bf16.mxu1 %v2748_v49  ;;  %v2802_v21 = vld [vmem:[#allocation6 + $0x364] ss:$16 sps:$4 sm:$0xff]   ;;  %v2797_v22 = vld [vmem:[#allocation6 + $0x160] ss:$16 sps:$4 sm:$0xff]  }
  0x49   :  { %v2800_v23 = vld [vmem:[#allocation6 + $0x360] ss:$16 sps:$4 sm:$0xff]   ;;  %v2805_v24 = vld [vmem:[#allocation6 + $0x144] ss:$16 sps:$4 sm:$0xff]  }
  0x4a   :  { %1183 = vmatpush1.bf16.msra.mxu0 %v2743_v50  ;;  %v2808_v25 = vld [vmem:[#allocation6 + $0x344] ss:$16 sps:$4 sm:$0xff]   ;;  %v2803_v26 = vld [vmem:[#allocation6 + $0x140] ss:$16 sps:$4 sm:$0xff]  }
  0x4b   :  { %1224 = vmatpush1.bf16.msra.mxu1 %v2746_v51  ;;  %1184 = vmatprep.subr.bf16.mxu0 %v2751_v52  ;;  %v2806_v27 = vld [vmem:[#allocation6 + $0x340] ss:$16 sps:$4 sm:$0xff]   ;;  %v2811_v28 = vld [vmem:[#allocation6 + $0x124] ss:$16 sps:$4 sm:$0xff]  }
  0x4c   :  { %1225 = vmatprep.subr.bf16.mxu1 %v2754_v53  ;;  %v2814_v29 = vld [vmem:[#allocation6 + $0x324] ss:$16 sps:$4 sm:$0xff]   ;;  %v2809_v30 = vld [vmem:[#allocation6 + $0x120] ss:$16 sps:$4 sm:$0xff]  }
  0x4d   :  { %v2812_v31 = vld [vmem:[#allocation6 + $0x320] ss:$16 sps:$4 sm:$0xff]   ;;  %v2817_v32 = vld [vmem:[#allocation6 + $0x104] ss:$16 sps:$4 sm:$0xff]  }
  0x4e   :  { %1185 = vmatpush1.bf16.msra.mxu0 %v2749_v54  ;;  %v2820_v33 = vld [vmem:[#allocation6 + $0x304] ss:$16 sps:$4 sm:$0xff]   ;;  %v2815_v34 = vld [vmem:[#allocation6 + $0x100] ss:$16 sps:$4 sm:$0xff]  }
  0x4f   :  { %1226 = vmatpush1.bf16.msra.mxu1 %v2752_v55  ;;  %1186 = vmatprep.subr.bf16.mxu0 %v2757_v56  ;;  %v2818_v35 = vld [vmem:[#allocation6 + $0x300] ss:$16 sps:$4 sm:$0xff]  }
  0x50   :  { %1227 = vmatprep.subr.bf16.mxu1 %v2760_v57  ;;  %v352_v42 = vld [vmem:[%s3376_s2] sm:$0xf] }
  0x51   :  { %v357_v45 = vrot.slane %v352_v42, %v3276_v40  ;;  %v365_v46 = vrot.slane %v352_v42, %v3278_v41  ;;  %v361_v47 = vrot.slane %v352_v42, %v3283_v43  ;;  %v369_v48 = vrot.slane %v352_v42, %v3285_v44  ;;  %v2868_v42 = vld [vmem:[#allocation6 + $0x20c] ss:$16 sps:$4 sm:$0xff]  }
  0x52   :  { %1187 = vmatpush1.bf16.msra.mxu0 %v2755_v58 }
  0x53   :  { %1228 = vmatpush1.bf16.msra.mxu1 %v2758_v59  ;;  %1188 = vmatprep.subr.bf16.mxu0 %v2763_v60 }
  0x54   :  { %1229 = vmatprep.subr.bf16.mxu1 %v2766_v61 }
  0x56   :  { %1189 = vmatpush1.bf16.msra.mxu0 %v2761_v62 }
  0x57   :  { %1230 = vmatpush1.bf16.msra.mxu1 %v2764_v63  ;;  %1190 = vmatprep.subr.bf16.mxu0 %v2769_v0 }
  0x58   :  { %1231 = vmatprep.subr.bf16.mxu1 %v2772_v1 }
  0x5a   :  { %1191 = vmatpush1.bf16.msra.mxu0 %v2767_v2 }
  0x5b   :  { %1232 = vmatpush1.bf16.msra.mxu1 %v2770_v3  ;;  %1192 = vmatprep.subr.bf16.mxu0 %v2775_v4  ;;  %v2821_v4 = vld [vmem:[#allocation6 + $0xe8] ss:$16 sps:$4 sm:$0xff]  }
  0x5c   :  { %1233 = vmatprep.subr.bf16.mxu1 %v2778_v5  ;;  %v2824_v5 = vld [vmem:[#allocation6 + $0x2e8] ss:$16 sps:$4 sm:$0xff]  }
  0x5e   :  { %1193 = vmatpush2.bf16.msra.mxu0 %v2773_v6 }
  0x5f   :  { %1234 = vmatpush2.bf16.msra.mxu1 %v2776_v7  ;;  %1194 = vmatprep.subr.bf16.mxu0 %v2781_v8 }
  0x60   :  { %1235 = vmatprep.subr.bf16.mxu1 %v2784_v9  ;;  %v2829_v9 = vld [vmem:[#allocation6 + $0xcc] ss:$16 sps:$4 sm:$0xff]  }
  0x62   :  { %1195 = vmatpush2.bf16.msra.mxu0 %v2779_v10  ;;  %v2832_v10 = vld [vmem:[#allocation6 + $0x2cc] ss:$16 sps:$4 sm:$0xff]  }
  0x63   :  { %1236 = vmatpush2.bf16.msra.mxu1 %v2782_v11  ;;  %1196 = vmatprep.subr.bf16.mxu0 %v2787_v12 }
  0x64   :  { %1237 = vmatprep.subr.bf16.mxu1 %v2790_v13  ;;  %v2827_v13 = vld [vmem:[#allocation6 + $0xc8] ss:$16 sps:$4 sm:$0xff]  }
  0x66   :  { %1197 = vmatpush2.bf16.msra.mxu0 %v2785_v14  ;;  %v2830_v14 = vld [vmem:[#allocation6 + $0x2c8] ss:$16 sps:$4 sm:$0xff]  }
  0x67   :  { %1238 = vmatpush2.bf16.msra.mxu1 %v2788_v15  ;;  %1198 = vmatprep.subr.bf16.mxu0 %v2793_v16  ;;  %v2835_v15 = vld [vmem:[#allocation6 + $0xac] ss:$16 sps:$4 sm:$0xff]  }
  0x68   :  { %1239 = vmatprep.subr.bf16.mxu1 %v2796_v17  ;;  %v2838_v16 = vld [vmem:[#allocation6 + $0x2ac] ss:$16 sps:$4 sm:$0xff]  }
  0x6a   :  { %1199 = vmatpush2.bf16.msra.mxu0 %v2791_v18 }
  0x6b   :  { %1240 = vmatpush2.bf16.msra.mxu1 %v2794_v19  ;;  %1200 = vmatprep.subr.bf16.mxu0 %v2799_v20 }
  0x6c   :  { %1241 = vmatprep.subr.bf16.mxu1 %v2802_v21  ;;  %v2833_v21 = vld [vmem:[#allocation6 + $0xa8] ss:$16 sps:$4 sm:$0xff]  }
  0x6e   :  { %1201 = vmatpush2.bf16.msra.mxu0 %v2797_v22  ;;  %v2836_v22 = vld [vmem:[#allocation6 + $0x2a8] ss:$16 sps:$4 sm:$0xff]  }
  0x6f   :  { %1242 = vmatpush2.bf16.msra.mxu1 %v2800_v23  ;;  %1202 = vmatprep.subr.bf16.mxu0 %v2805_v24  ;;  %v2841_v23 = vld [vmem:[#allocation6 + $0x8c] ss:$16 sps:$4 sm:$0xff]  }
  0x70   :  { %1243 = vmatprep.subr.bf16.mxu1 %v2808_v25  ;;  %v2844_v24 = vld [vmem:[#allocation6 + $0x28c] ss:$16 sps:$4 sm:$0xff]   ;;  %v2839_v25 = vld [vmem:[#allocation6 + $0x88] ss:$16 sps:$4 sm:$0xff]  }
  0x72   :  { %1203 = vmatpush2.bf16.msra.mxu0 %v2803_v26  ;;  %v2842_v26 = vld [vmem:[#allocation6 + $0x288] ss:$16 sps:$4 sm:$0xff]  }
  0x73   :  { %1244 = vmatpush2.bf16.msra.mxu1 %v2806_v27  ;;  %1204 = vmatprep.subr.bf16.mxu0 %v2811_v28  ;;  %v2847_v27 = vld [vmem:[#allocation6 + $0x6c] ss:$16 sps:$4 sm:$0xff]  }
  0x74   :  { %1245 = vmatprep.subr.bf16.mxu1 %v2814_v29  ;;  %v2850_v28 = vld [vmem:[#allocation6 + $0x26c] ss:$16 sps:$4 sm:$0xff]   ;;  %v2845_v29 = vld [vmem:[#allocation6 + $0x68] ss:$16 sps:$4 sm:$0xff]  }
  0x76   :  { %1205 = vmatpush2.bf16.msra.mxu0 %v2809_v30  ;;  %v2848_v30 = vld [vmem:[#allocation6 + $0x268] ss:$16 sps:$4 sm:$0xff]  }
  0x77   :  { %1246 = vmatpush2.bf16.msra.mxu1 %v2812_v31  ;;  %1206 = vmatprep.subr.bf16.mxu0 %v2817_v32  ;;  %v2853_v31 = vld [vmem:[#allocation6 + $0x4c] ss:$16 sps:$4 sm:$0xff]  }
  0x78   :  { %1247 = vmatprep.subr.bf16.mxu1 %v2820_v33  ;;  %v2856_v32 = vld [vmem:[#allocation6 + $0x24c] ss:$16 sps:$4 sm:$0xff]   ;;  %v2851_v33 = vld [vmem:[#allocation6 + $0x48] ss:$16 sps:$4 sm:$0xff]  }
  0x7a   :  { %1207 = vmatpush2.bf16.msra.mxu0 %v2815_v34  ;;  %v2854_v34 = vld [vmem:[#allocation6 + $0x248] ss:$16 sps:$4 sm:$0xff]  }
  0x7b   :  { %1248 = vmatpush2.bf16.msra.mxu1 %v2818_v35  ;;  %1258 = vmatprep.subr.bf16.mxu0 %v2823_v36  ;;  %v2859_v35 = vld [vmem:[#allocation6 + $0x2c] ss:$16 sps:$4 sm:$0xff]  }
  0x7c   :  { %1299 = vmatprep.subr.bf16.mxu1 %v2826_v37  ;;  %v2862_v36 = vld [vmem:[#allocation6 + $0x22c] ss:$16 sps:$4 sm:$0xff]   ;;  %v2857_v37 = vld [vmem:[#allocation6 + $0x28] ss:$16 sps:$4 sm:$0xff]  }
  0xf5   :  { %v222_v49 = vpop.f32.mrf.mxu0 }
  0xf6   :  { %v263_v50 = vpop.f32.mrf.mxu1  ;;  %v374_v51 = vadd.f32 %v357_v45, %v222_v49  ;;  %v2863_v45 = vld [vmem:[#allocation6 + $0x8] ss:$16 sps:$4 sm:$0xff]  }
  0xf7   :  { %v376_v52 = vadd.f32 %v365_v46, %v263_v50  ;;  %v224_v53 = vpop.f32.mrf.mxu0  ;;  %v2866_v46 = vld [vmem:[#allocation6 + $0x208] ss:$16 sps:$4 sm:$0xff]  }
  0xf8   :  { %v265_v54 = vpop.f32.mrf.mxu1  ;;  %v375_v56 = vadd.f32 %v361_v47, %v224_v53  ;;  %v378_v58 = vmax.f32 %v374_v51, 0.0  ;;  %v2871_v47 = vld [vmem:[#allocation6 + $0x1ec] ss:$16 sps:$4 sm:$0xff]   ;;  %v2869_v49 = vld [vmem:[#allocation6 + $0x1e8] ss:$16 sps:$4 sm:$0xff]  }
  0xf9   :  { %v380_v55 = vmax.f32 %v376_v52, 0.0  ;;  %v377_v57 = vadd.f32 %v369_v48, %v265_v54  ;;  %v226_v59 = vpop.f32.mrf.mxu0  ;;  %v2874_v48 = vld [vmem:[#allocation6 + $0x3ec] ss:$16 sps:$4 sm:$0xff]   ;;  %v2872_v50 = vld [vmem:[#allocation6 + $0x3e8] ss:$16 sps:$4 sm:$0xff]  }
  0xfa   :  { %v267_v60 = vpop.f32.mrf.mxu1  ;;  %v379_v61 = vmax.f32 %v375_v56, 0.0  ;;  %v3293_v6 = vpack.c.bf16 %v378_v58, %v378_v58  ;;  %v2877_v51 = vld [vmem:[#allocation6 + $0x1cc] ss:$16 sps:$4 sm:$0xff]   ;;  %v2875_v53 = vld [vmem:[#allocation6 + $0x1c8] ss:$16 sps:$4 sm:$0xff]  }
  0xfb   :  { %v381_v62 = vmax.f32 %v377_v57, 0.0  ;;  %v3291_v63 = vpack.c.bf16 %v380_v55, %v380_v55  ;;  %v227_v0 = vpop.f32.mrf.mxu0  ;;  %v2880_v52 = vld [vmem:[#allocation6 + $0x3cc] ss:$16 sps:$4 sm:$0xff]   ;;  %v2878_v54 = vld [vmem:[#allocation6 + $0x3c8] ss:$16 sps:$4 sm:$0xff]  }
  0xfc   :  { %v268_v1 = vpop.f32.mrf.mxu1  ;;  %v383_v2 = vpack.c.bf16 %v379_v61, %v379_v61  ;;  %v2883_v55 = vld [vmem:[#allocation6 + $0x1ac] ss:$16 sps:$4 sm:$0xff]   ;;  %v2881_v57 = vld [vmem:[#allocation6 + $0x1a8] ss:$16 sps:$4 sm:$0xff]  }
  0xfd   :  { %v385_v3 = vpack.c.bf16 %v381_v62, %v381_v62  ;;  %v3295_v7 = vpop.f32.mrf.mxu0  ;;  %v2886_v56 = vld [vmem:[#allocation6 + $0x3ac] ss:$16 sps:$4 sm:$0xff]   ;;  %v2884_v58 = vld [vmem:[#allocation6 + $0x3a8] ss:$16 sps:$4 sm:$0xff]  }
  0xfe   :  { %v3297_v8 = vpop.f32.mrf.mxu1  ;;  %1208 = vmatprep.mubr.bf16.mxu0 %v383_v2  ;;  %v2889_v59 = vld [vmem:[#allocation6 + $0x18c] ss:$16 sps:$4 sm:$0xff]   ;;  %v2887_v61 = vld [vmem:[#allocation6 + $0x188] ss:$16 sps:$4 sm:$0xff]  }
  0xff   :  { %1249 = vmatprep.mubr.bf16.mxu1 %v385_v3  ;;  %1209 = vmatmul.mubr.bf16.vlgmr.msra.gmra.mxu0 %v3293_v6  ;;  %v3301_v11 = vpop.f32.mrf.mxu0  ;;  %v2892_v60 = vld [vmem:[#allocation6 + $0x38c] ss:$16 sps:$4 sm:$0xff]   ;;  %v2890_v62 = vld [vmem:[#allocation6 + $0x388] ss:$16 sps:$4 sm:$0xff]  }
 0x100   :  { %1250 = vmatmul.mubr.bf16.vlgmr.msra.gmra.mxu1 %v3291_v63  ;;  %v3303_v12 = vpop.f32.mrf.mxu1  ;;  %1259 = vmatpush1.bf16.msra.mxu0 %v2821_v4  ;;  %v2895_v0 = vld [vmem:[#allocation6 + $0x16c] ss:$16 sps:$4 sm:$0xff]  }
 0x101   :  { %1300 = vmatpush1.bf16.msra.mxu1 %v2824_v5  ;;  %1290 = vmatprep.mubr.bf16.mxu0 %v383_v2  ;;  %v308_v17 = vpop.f32.mrf.mxu0  ;;  %v2898_v1 = vld [vmem:[#allocation6 + $0x36c] ss:$16 sps:$4 sm:$0xff]   ;;  %v2893_v2 = vld [vmem:[#allocation6 + $0x168] ss:$16 sps:$4 sm:$0xff]  }
 0x102   :  { %1331 = vmatprep.mubr.bf16.mxu1 %v385_v3  ;;  %v349_v18 = vpop.f32.mrf.mxu1  ;;  %1260 = vmatprep.subr.bf16.mxu0 %v2829_v9  ;;  %v2896_v3 = vld [vmem:[#allocation6 + $0x368] ss:$16 sps:$4 sm:$0xff]   ;;  %v2901_v4 = vld [vmem:[#allocation6 + $0x14c] ss:$16 sps:$4 sm:$0xff]   ;;  %v3308_v9 = vld [vmem:[%s3376_s2 + $0x4] sm:$0xf] }
 0x103   :  { %1301 = vmatprep.subr.bf16.mxu1 %v2832_v10  ;;  %v309_v19 = vpop.f32.mrf.mxu0  ;;  %v2904_v5 = vld [vmem:[#allocation6 + $0x34c] ss:$16 sps:$4 sm:$0xff]   ;;  %v2899_v10 = vld [vmem:[#allocation6 + $0x148] ss:$16 sps:$4 sm:$0xff]   ;;  %v1402_v17 = vrot.slane %v3308_v9, %v3285_v44 }
 0x104   :  { %v350_v20 = vpop.f32.mrf.mxu1  ;;  %1261 = vmatpush1.bf16.msra.mxu0 %v2827_v13  ;;  %v2902_v13 = vld [vmem:[#allocation6 + $0x348] ss:$16 sps:$4 sm:$0xff]  }
 0x105   :  { %1302 = vmatpush1.bf16.msra.mxu1 %v2830_v14  ;;  %1262 = vmatprep.subr.bf16.mxu0 %v2835_v15  ;;  %v2907_v14 = vld [vmem:[#allocation6 + $0x12c] ss:$16 sps:$4 sm:$0xff]   ;;  %v2905_v18 = vld [vmem:[#allocation6 + $0x128] ss:$16 sps:$4 sm:$0xff]  }
 0x106   :  { %1303 = vmatprep.subr.bf16.mxu1 %v2838_v16  ;;  %v2910_v15 = vld [vmem:[#allocation6 + $0x32c] ss:$16 sps:$4 sm:$0xff]   ;;  %v1394_v16 = vrot.slane %v3308_v9, %v3283_v43  ;;  %v2908_v19 = vld [vmem:[#allocation6 + $0x328] ss:$16 sps:$4 sm:$0xff]  }
 0x107   :  { %v2913_v20 = vld [vmem:[#allocation6 + $0x10c] ss:$16 sps:$4 sm:$0xff]  }
 0x108   :  { %1263 = vmatpush1.bf16.msra.mxu0 %v2833_v21  ;;  %v2916_v21 = vld [vmem:[#allocation6 + $0x30c] ss:$16 sps:$4 sm:$0xff]  }
 0x109   :  { %1304 = vmatpush1.bf16.msra.mxu1 %v2836_v22  ;;  %1264 = vmatprep.subr.bf16.mxu0 %v2841_v23  ;;  %v1408_v22 = vadd.f32 %v1394_v16, %v3301_v11  ;;  %v1410_v23 = vadd.f32 %v1402_v17, %v3303_v12  ;;  %v2928_v11 = vld [vmem:[#allocation8 + $0x2c4] ss:$16 sps:$4 sm:$0xff]   ;;  %v2980_v16 = vld [vmem:[#allocation8 + $0x3a0] ss:$16 sps:$4 sm:$0xff]  }
 0x10a   :  { %1305 = vmatprep.subr.bf16.mxu1 %v2844_v24  ;;  %v2911_v24 = vld [vmem:[#allocation6 + $0x108] ss:$16 sps:$4 sm:$0xff]   ;;  %v2985_v17 = vld [vmem:[#allocation8 + $0x184] ss:$16 sps:$4 sm:$0xff]  }
 0x10c   :  { %1265 = vmatpush1.bf16.msra.mxu0 %v2839_v25  ;;  %v2914_v25 = vld [vmem:[#allocation6 + $0x308] ss:$16 sps:$4 sm:$0xff]  }
 0x10d   :  { %1306 = vmatpush1.bf16.msra.mxu1 %v2842_v26  ;;  %1266 = vmatprep.subr.bf16.mxu0 %v2847_v27  ;;  %v2919_v26 = vld [vmem:[#allocation8 + $0xe4] ss:$16 sps:$4 sm:$0xff]  }
 0x10e   :  { %1307 = vmatprep.subr.bf16.mxu1 %v2850_v28  ;;  %v2922_v27 = vld [vmem:[#allocation8 + $0x2e4] ss:$16 sps:$4 sm:$0xff]   ;;  %v1412_v28 = vmax.f32 %v1408_v22, 0.0 }
 0x10f   :  { %v2994_v22 = vld [vmem:[#allocation8 + $0x364] ss:$16 sps:$4 sm:$0xff]  }
 0x110   :  { %1267 = vmatpush1.bf16.msra.mxu0 %v2845_v29  ;;  %v1414_v29 = vmax.f32 %v1410_v23, 0.0  ;;  %v2989_v23 = vld [vmem:[#allocation8 + $0x160] ss:$16 sps:$4 sm:$0xff]  }
 0x111   :  { %1308 = vmatpush1.bf16.msra.mxu1 %v2848_v30  ;;  %1268 = vmatprep.subr.bf16.mxu0 %v2853_v31  ;;  %v2917_v30 = vld [vmem:[#allocation8 + $0xe0] ss:$16 sps:$4 sm:$0xff]  }
 0x112   :  { %1309 = vmatprep.subr.bf16.mxu1 %v2856_v32  ;;  %v2920_v31 = vld [vmem:[#allocation8 + $0x2e0] ss:$16 sps:$4 sm:$0xff]   ;;  %v2925_v32 = vld [vmem:[#allocation8 + $0xc4] ss:$16 sps:$4 sm:$0xff]   ;;  %v3318_v12 = vpack.c.bf16 %v1414_v29, %v1414_v29 }
 0x113   :  { %v2998_v29 = vld [vmem:[#allocation8 + $0x340] ss:$16 sps:$4 sm:$0xff]  }
 0x114   :  { %1269 = vmatpush1.bf16.msra.mxu0 %v2851_v33  ;;  %v3316_v33 = vpack.c.bf16 %v1412_v28, %v1412_v28  ;;  %v2995_v28 = vld [vmem:[#allocation8 + $0x140] ss:$16 sps:$4 sm:$0xff]  }
 0x115   :  { %1310 = vmatpush1.bf16.msra.mxu1 %v2854_v34  ;;  %1270 = vmatprep.subr.bf16.mxu0 %v2859_v35  ;;  %v2923_v34 = vld [vmem:[#allocation8 + $0xc0] ss:$16 sps:$4 sm:$0xff]  }
 0x116   :  { %1311 = vmatprep.subr.bf16.mxu1 %v2862_v36  ;;  %v2926_v35 = vld [vmem:[#allocation8 + $0x2c0] ss:$16 sps:$4 sm:$0xff]   ;;  %v2931_v36 = vld [vmem:[#allocation8 + $0xa4] ss:$16 sps:$4 sm:$0xff]  }
 0x118   :  { %1271 = vmatpush1.bf16.msra.mxu0 %v2857_v37  ;;  %v2934_v37 = vld [vmem:[#allocation8 + $0x2a4] ss:$16 sps:$4 sm:$0xff]  }
 0x119   :  { %1312 = vmatpush1.bf16.msra.mxu1 %v2860_v38  ;;  %1272 = vmatprep.subr.bf16.mxu0 %v2865_v39  ;;  %v2929_v38 = vld [vmem:[#allocation8 + $0xa0] ss:$16 sps:$4 sm:$0xff]  }
 0x11a   :  { %1313 = vmatprep.subr.bf16.mxu1 %v2868_v42  ;;  %v2932_v39 = vld [vmem:[#allocation8 + $0x2a0] ss:$16 sps:$4 sm:$0xff]  }
 0x11b   :  { %v2935_v42 = vld [vmem:[#allocation8 + $0x80] ss:$16 sps:$4 sm:$0xff]  }
 0x11c   :  { %1273 = vmatpush1.bf16.msra.mxu0 %v2863_v45  ;;  %v2938_v45 = vld [vmem:[#allocation8 + $0x280] ss:$16 sps:$4 sm:$0xff]  }
 0x11d   :  { %1314 = vmatpush1.bf16.msra.mxu1 %v2866_v46  ;;  %1274 = vmatprep.subr.bf16.mxu0 %v2871_v47  ;;  %v2943_v46 = vld [vmem:[#allocation8 + $0x64] ss:$16 sps:$4 sm:$0xff]  }
 0x11e   :  { %1315 = vmatprep.subr.bf16.mxu1 %v2874_v48  ;;  %v2946_v47 = vld [vmem:[#allocation8 + $0x264] ss:$16 sps:$4 sm:$0xff]   ;;  %v2941_v48 = vld [vmem:[#allocation8 + $0x60] ss:$16 sps:$4 sm:$0xff]  }
 0x120   :  { %1275 = vmatpush2.bf16.msra.mxu0 %v2869_v49  ;;  %v2944_v49 = vld [vmem:[#allocation8 + $0x260] ss:$16 sps:$4 sm:$0xff]  }
 0x121   :  { %1316 = vmatpush2.bf16.msra.mxu1 %v2872_v50  ;;  %1276 = vmatprep.subr.bf16.mxu0 %v2877_v51  ;;  %v2949_v50 = vld [vmem:[#allocation8 + $0x44] ss:$16 sps:$4 sm:$0xff]  }
 0x122   :  { %1317 = vmatprep.subr.bf16.mxu1 %v2880_v52  ;;  %v2952_v51 = vld [vmem:[#allocation8 + $0x244] ss:$16 sps:$4 sm:$0xff]   ;;  %v2947_v52 = vld [vmem:[#allocation8 + $0x40] ss:$16 sps:$4 sm:$0xff]  }
 0x124   :  { %1277 = vmatpush2.bf16.msra.mxu0 %v2875_v53  ;;  %v2950_v53 = vld [vmem:[#allocation8 + $0x240] ss:$16 sps:$4 sm:$0xff]  }
 0x125   :  { %1318 = vmatpush2.bf16.msra.mxu1 %v2878_v54  ;;  %1278 = vmatprep.subr.bf16.mxu0 %v2883_v55  ;;  %v2955_v54 = vld [vmem:[#allocation8 + $0x24] ss:$16 sps:$4 sm:$0xff]  }
 0x126   :  { %1319 = vmatprep.subr.bf16.mxu1 %v2886_v56  ;;  %v2958_v55 = vld [vmem:[#allocation8 + $0x224] ss:$16 sps:$4 sm:$0xff]   ;;  %v2953_v56 = vld [vmem:[#allocation8 + $0x20] ss:$16 sps:$4 sm:$0xff]  }
 0x128   :  { %1279 = vmatpush2.bf16.msra.mxu0 %v2881_v57  ;;  %v2956_v57 = vld [vmem:[#allocation8 + $0x220] ss:$16 sps:$4 sm:$0xff]  }
 0x129   :  { %1320 = vmatpush2.bf16.msra.mxu1 %v2884_v58  ;;  %1280 = vmatprep.subr.bf16.mxu0 %v2889_v59  ;;  %v2961_v58 = vld [vmem:[#allocation8 + $0x4] ss:$16 sps:$4 sm:$0xff]  }
 0x12a   :  { %1321 = vmatprep.subr.bf16.mxu1 %v2892_v60  ;;  %v2964_v59 = vld [vmem:[#allocation8 + $0x204] ss:$16 sps:$4 sm:$0xff]   ;;  %v2959_v60 = vld [vmem:[#allocation8] ss:$16 sps:$4 sm:$0xff]  }
 0x12c   :  { %1281 = vmatpush2.bf16.msra.mxu0 %v2887_v61  ;;  %v2962_v61 = vld [vmem:[#allocation8 + $0x200] ss:$16 sps:$4 sm:$0xff]  }
 0x12d   :  { %1322 = vmatpush2.bf16.msra.mxu1 %v2890_v62  ;;  %1282 = vmatprep.subr.bf16.mxu0 %v2895_v0  ;;  %v2967_v62 = vld [vmem:[#allocation8 + $0x1e4] ss:$16 sps:$4 sm:$0xff]  }
 0x12e   :  { %1323 = vmatprep.subr.bf16.mxu1 %v2898_v1  ;;  %v2970_v0 = vld [vmem:[#allocation8 + $0x3e4] ss:$16 sps:$4 sm:$0xff]   ;;  %v2965_v1 = vld [vmem:[#allocation8 + $0x1e0] ss:$16 sps:$4 sm:$0xff]  }
 0x130   :  { %1283 = vmatpush2.bf16.msra.mxu0 %v2893_v2  ;;  %v2968_v2 = vld [vmem:[#allocation8 + $0x3e0] ss:$16 sps:$4 sm:$0xff]  }
 0x131   :  { %1324 = vmatpush2.bf16.msra.mxu1 %v2896_v3  ;;  %1284 = vmatprep.subr.bf16.mxu0 %v2901_v4  ;;  %v2973_v3 = vld [vmem:[#allocation8 + $0x1c4] ss:$16 sps:$4 sm:$0xff]  }
 0x132   :  { %1325 = vmatprep.subr.bf16.mxu1 %v2904_v5  ;;  %v2976_v4 = vld [vmem:[#allocation8 + $0x3c4] ss:$16 sps:$4 sm:$0xff]   ;;  %v2971_v5 = vld [vmem:[#allocation8 + $0x1c0] ss:$16 sps:$4 sm:$0xff]  }
 0x134   :  { %1285 = vmatpush2.bf16.msra.mxu0 %v2899_v10  ;;  %v2974_v10 = vld [vmem:[#allocation8 + $0x3c0] ss:$16 sps:$4 sm:$0xff]  }
 0x135   :  { %1326 = vmatpush2.bf16.msra.mxu1 %v2902_v13  ;;  %1286 = vmatprep.subr.bf16.mxu0 %v2907_v14  ;;  %v2979_v13 = vld [vmem:[#allocation8 + $0x1a4] ss:$16 sps:$4 sm:$0xff]  }
 0x136   :  { %1327 = vmatprep.subr.bf16.mxu1 %v2910_v15  ;;  %v2982_v14 = vld [vmem:[#allocation8 + $0x3a4] ss:$16 sps:$4 sm:$0xff]   ;;  %v2977_v15 = vld [vmem:[#allocation8 + $0x1a0] ss:$16 sps:$4 sm:$0xff]  }
 0x138   :  { %1287 = vmatpush2.bf16.msra.mxu0 %v2905_v18  ;;  %v2988_v18 = vld [vmem:[#allocation8 + $0x384] ss:$16 sps:$4 sm:$0xff]  }
 0x139   :  { %1328 = vmatpush2.bf16.msra.mxu1 %v2908_v19  ;;  %1288 = vmatprep.subr.bf16.mxu0 %v2913_v20  ;;  %v2983_v19 = vld [vmem:[#allocation8 + $0x180] ss:$16 sps:$4 sm:$0xff]  }
 0x13a   :  { %1329 = vmatprep.subr.bf16.mxu1 %v2916_v21  ;;  %v2986_v20 = vld [vmem:[#allocation8 + $0x380] ss:$16 sps:$4 sm:$0xff]   ;;  %v2991_v21 = vld [vmem:[#allocation8 + $0x164] ss:$16 sps:$4 sm:$0xff]  }
 0x13c   :  { %1289 = vmatpush2.bf16.msra.mxu0 %v2911_v24  ;;  %v2992_v24 = vld [vmem:[#allocation8 + $0x360] ss:$16 sps:$4 sm:$0xff]  }
 0x13d   :  { %1330 = vmatpush2.bf16.msra.mxu1 %v2914_v25  ;;  %2209 = vmatprep.subr.bf16.mxu0 %v2919_v26  ;;  %v2997_v25 = vld [vmem:[#allocation8 + $0x144] ss:$16 sps:$4 sm:$0xff]  }
 0x13e   :  { %2250 = vmatprep.subr.bf16.mxu1 %v2922_v27  ;;  %v3000_v26 = vld [vmem:[#allocation8 + $0x344] ss:$16 sps:$4 sm:$0xff]   ;;  %v1398_v27 = vrot.slane %v3308_v9, %v3278_v41 }
 0x13f   :  { %1291 = vmatmul.mubr.bf16.vlgmr.msra.gmra.mxu0 %v3293_v6  ;;  %v2937_v6 = vld [vmem:[#allocation8 + $0x84] ss:$16 sps:$4 sm:$0xff]  }
 0x140   :  { %1332 = vmatmul.mubr.bf16.vlgmr.msra.gmra.mxu1 %v3291_v63  ;;  %2210 = vmatpush1.bf16.msra.mxu0 %v2917_v30  ;;  %v2940_v63 = vld [vmem:[#allocation8 + $0x284] ss:$16 sps:$4 sm:$0xff]   ;;  %v1390_v30 = vrot.slane %v3308_v9, %v3276_v40  ;;  %v3007_v9 = vld [vmem:[#allocation8 + $0x100] ss:$16 sps:$4 sm:$0xff]  }
 0x141   :  { %2251 = vmatpush1.bf16.msra.mxu1 %v2920_v31  ;;  %2211 = vmatprep.subr.bf16.mxu0 %v2925_v32  ;;  %v3003_v31 = vld [vmem:[#allocation8 + $0x124] ss:$16 sps:$4 sm:$0xff]  }
 0x142   :  { %2252 = vmatprep.subr.bf16.mxu1 %v2928_v11  ;;  %2241 = vmatprep.mubr.bf16.mxu0 %v3316_v33  ;;  %v3006_v32 = vld [vmem:[#allocation8 + $0x324] ss:$16 sps:$4 sm:$0xff]   ;;  %v1409_v11 = vadd.f32 %v1398_v27, %v3297_v8  ;;  %v3018_v8 = vld [vmem:[#allocation8 + $0x2ec] ss:$16 sps:$4 sm:$0xff]   ;;  %v3073_v27 = vld [vmem:[#allocation8 + $0x1a8] ss:$16 sps:$4 sm:$0xff]  }
 0x143   :  { %2282 = vmatprep.mubr.bf16.mxu1 %v3318_v12 }
 0x144   :  { %2212 = vmatpush1.bf16.msra.mxu0 %v2923_v34  ;;  %v3001_v34 = vld [vmem:[#allocation8 + $0x120] ss:$16 sps:$4 sm:$0xff]  }
 0x145   :  { %2253 = vmatpush1.bf16.msra.mxu1 %v2926_v35  ;;  %2213 = vmatprep.subr.bf16.mxu0 %v2931_v36  ;;  %v3004_v35 = vld [vmem:[#allocation8 + $0x320] ss:$16 sps:$4 sm:$0xff]   ;;  %v1407_v36 = vadd.f32 %v1390_v30, %v3295_v7  ;;  %v3084_v30 = vld [vmem:[#allocation8 + $0x38c] ss:$16 sps:$4 sm:$0xff]  }
 0x146   :  { %2254 = vmatprep.subr.bf16.mxu1 %v2934_v37  ;;  %v3009_v37 = vld [vmem:[#allocation8 + $0x104] ss:$16 sps:$4 sm:$0xff]  }
 0x148   :  { %2214 = vmatpush1.bf16.msra.mxu0 %v2929_v38  ;;  %v3012_v38 = vld [vmem:[#allocation8 + $0x304] ss:$16 sps:$4 sm:$0xff]  }
 0x149   :  { %2255 = vmatpush1.bf16.msra.mxu1 %v2932_v39  ;;  %2215 = vmatprep.subr.bf16.mxu0 %v2937_v6  ;;  %v1413_v39 = vmax.f32 %v1409_v11, 0.0  ;;  %v3010_v6 = vld [vmem:[#allocation8 + $0x300] ss:$16 sps:$4 sm:$0xff]   ;;  %v3087_v11 = vld [vmem:[#allocation8 + $0x16c] ss:$16 sps:$4 sm:$0xff]  }
 0x14a   :  { %2256 = vmatprep.subr.bf16.mxu1 %v2940_v63  ;;  %v1411_v63 = vmax.f32 %v1407_v36, 0.0  ;;  %v3088_v36 = vld [vmem:[#allocation8 + $0x368] ss:$16 sps:$4 sm:$0xff]  }
 0x14c   :  { %2216 = vmatpush1.bf16.msra.mxu0 %v2935_v42  ;;  %v3015_v42 = vld [vmem:[#allocation8 + $0xec] ss:$16 sps:$4 sm:$0xff]   ;;  %v3332_v7 = vpack.c.bf16 %v1411_v63, %v1411_v63 }
 0x14d   :  { %2257 = vmatpush1.bf16.msra.mxu1 %v2938_v45  ;;  %2217 = vmatprep.subr.bf16.mxu0 %v2943_v46  ;;  %v3330_v45 = vpack.c.bf16 %v1413_v39, %v1413_v39  ;;  %v3013_v46 = vld [vmem:[#allocation8 + $0xe8] ss:$16 sps:$4 sm:$0xff]   ;;  %v3102_v63 = vld [vmem:[#allocation8 + $0x32c] ss:$16 sps:$4 sm:$0xff]  }
 0x14e   :  { %2258 = vmatprep.subr.bf16.mxu1 %v2946_v47  ;;  %v3016_v47 = vld [vmem:[#allocation8 + $0x2e8] ss:$16 sps:$4 sm:$0xff]  }
 0x14f   :  { %v3091_v39 = vld [vmem:[#allocation8 + $0x148] ss:$16 sps:$4 sm:$0xff]  }
 0x150   :  { %2218 = vmatpush1.bf16.msra.mxu0 %v2941_v48  ;;  %v3021_v48 = vld [vmem:[#allocation8 + $0xcc] ss:$16 sps:$4 sm:$0xff]  }
 0x151   :  { %2259 = vmatpush1.bf16.msra.mxu1 %v2944_v49  ;;  %2219 = vmatprep.subr.bf16.mxu0 %v2949_v50  ;;  %v3024_v49 = vld [vmem:[#allocation8 + $0x2cc] ss:$16 sps:$4 sm:$0xff]   ;;  %v3019_v50 = vld [vmem:[#allocation8 + $0xc8] ss:$16 sps:$4 sm:$0xff]  }
 0x152   :  { %2260 = vmatprep.subr.bf16.mxu1 %v2952_v51  ;;  %v3022_v51 = vld [vmem:[#allocation8 + $0x2c8] ss:$16 sps:$4 sm:$0xff]  }
 0x154   :  { %2220 = vmatpush1.bf16.msra.mxu0 %v2947_v52  ;;  %v3027_v52 = vld [vmem:[#allocation8 + $0xac] ss:$16 sps:$4 sm:$0xff]  }
 0x155   :  { %2261 = vmatpush1.bf16.msra.mxu1 %v2950_v53  ;;  %2221 = vmatprep.subr.bf16.mxu0 %v2955_v54  ;;  %v3030_v53 = vld [vmem:[#allocation8 + $0x2ac] ss:$16 sps:$4 sm:$0xff]   ;;  %v3025_v54 = vld [vmem:[#allocation8 + $0xa8] ss:$16 sps:$4 sm:$0xff]  }
 0x156   :  { %2262 = vmatprep.subr.bf16.mxu1 %v2958_v55  ;;  %v3028_v55 = vld [vmem:[#allocation8 + $0x2a8] ss:$16 sps:$4 sm:$0xff]  }
 0x158   :  { %2222 = vmatpush1.bf16.msra.mxu0 %v2953_v56  ;;  %v3033_v56 = vld [vmem:[#allocation8 + $0x8c] ss:$16 sps:$4 sm:$0xff]  }
 0x159   :  { %2263 = vmatpush1.bf16.msra.mxu1 %v2956_v57  ;;  %2223 = vmatprep.subr.bf16.mxu0 %v2961_v58  ;;  %v3036_v57 = vld [vmem:[#allocation8 + $0x28c] ss:$16 sps:$4 sm:$0xff]   ;;  %v3031_v58 = vld [vmem:[#allocation8 + $0x88] ss:$16 sps:$4 sm:$0xff]  }
 0x15a   :  { %2264 = vmatprep.subr.bf16.mxu1 %v2964_v59  ;;  %v3039_v59 = vld [vmem:[#allocation8 + $0x6c] ss:$16 sps:$4 sm:$0xff]  }
 0x15c   :  { %2224 = vmatpush1.bf16.msra.mxu0 %v2959_v60  ;;  %v3037_v60 = vld [vmem:[#allocation8 + $0x68] ss:$16 sps:$4 sm:$0xff]  }
 0x15d   :  { %2265 = vmatpush1.bf16.msra.mxu1 %v2962_v61  ;;  %2225 = vmatprep.subr.bf16.mxu0 %v2967_v62  ;;  %v3040_v61 = vld [vmem:[#allocation8 + $0x268] ss:$16 sps:$4 sm:$0xff]   ;;  %v3045_v62 = vld [vmem:[#allocation8 + $0x4c] ss:$16 sps:$4 sm:$0xff]  }
 0x15e   :  { %2266 = vmatprep.subr.bf16.mxu1 %v2970_v0  ;;  %v3048_v0 = vld [vmem:[#allocation8 + $0x24c] ss:$16 sps:$4 sm:$0xff]  }
 0x160   :  { %2226 = vmatpush2.bf16.msra.mxu0 %v2965_v1  ;;  %v3043_v1 = vld [vmem:[#allocation8 + $0x48] ss:$16 sps:$4 sm:$0xff]  }
 0x161   :  { %2267 = vmatpush2.bf16.msra.mxu1 %v2968_v2  ;;  %2227 = vmatprep.subr.bf16.mxu0 %v2973_v3  ;;  %v3046_v2 = vld [vmem:[#allocation8 + $0x248] ss:$16 sps:$4 sm:$0xff]   ;;  %v3051_v3 = vld [vmem:[#allocation8 + $0x2c] ss:$16 sps:$4 sm:$0xff]  }
 0x162   :  { %2268 = vmatprep.subr.bf16.mxu1 %v2976_v4  ;;  %v3054_v4 = vld [vmem:[#allocation8 + $0x22c] ss:$16 sps:$4 sm:$0xff]  }
 0x164   :  { %2228 = vmatpush2.bf16.msra.mxu0 %v2971_v5  ;;  %v3049_v5 = vld [vmem:[#allocation8 + $0x28] ss:$16 sps:$4 sm:$0xff]  }
 0x165   :  { %2269 = vmatpush2.bf16.msra.mxu1 %v2974_v10  ;;  %2229 = vmatprep.subr.bf16.mxu0 %v2979_v13  ;;  %v3052_v10 = vld [vmem:[#allocation8 + $0x228] ss:$16 sps:$4 sm:$0xff]   ;;  %v3057_v13 = vld [vmem:[#allocation8 + $0xc] ss:$16 sps:$4 sm:$0xff]  }
 0x166   :  { %2270 = vmatprep.subr.bf16.mxu1 %v2982_v14  ;;  %v3060_v14 = vld [vmem:[#allocation8 + $0x20c] ss:$16 sps:$4 sm:$0xff]  }
 0x168   :  { %2230 = vmatpush2.bf16.msra.mxu0 %v2977_v15  ;;  %v3055_v15 = vld [vmem:[#allocation8 + $0x8] ss:$16 sps:$4 sm:$0xff]  }
 0x169   :  { %2271 = vmatpush2.bf16.msra.mxu1 %v2980_v16  ;;  %2231 = vmatprep.subr.bf16.mxu0 %v2985_v17  ;;  %v3058_v16 = vld [vmem:[#allocation8 + $0x208] ss:$16 sps:$4 sm:$0xff]   ;;  %v3063_v17 = vld [vmem:[#allocation8 + $0x1ec] ss:$16 sps:$4 sm:$0xff]  }
 0x16a   :  { %2272 = vmatprep.subr.bf16.mxu1 %v2988_v18  ;;  %v3066_v18 = vld [vmem:[#allocation8 + $0x3ec] ss:$16 sps:$4 sm:$0xff]  }
 0x16c   :  { %2232 = vmatpush2.bf16.msra.mxu0 %v2983_v19  ;;  %v3061_v19 = vld [vmem:[#allocation8 + $0x1e8] ss:$16 sps:$4 sm:$0xff]  }
 0x16d   :  { %2273 = vmatpush2.bf16.msra.mxu1 %v2986_v20  ;;  %2233 = vmatprep.subr.bf16.mxu0 %v2991_v21  ;;  %v3064_v20 = vld [vmem:[#allocation8 + $0x3e8] ss:$16 sps:$4 sm:$0xff]   ;;  %v3069_v21 = vld [vmem:[#allocation8 + $0x1cc] ss:$16 sps:$4 sm:$0xff]  }
 0x16e   :  { %2274 = vmatprep.subr.bf16.mxu1 %v2994_v22  ;;  %v3072_v22 = vld [vmem:[#allocation8 + $0x3cc] ss:$16 sps:$4 sm:$0xff]  }
 0x170   :  { %2234 = vmatpush2.bf16.msra.mxu0 %v2989_v23  ;;  %v3067_v23 = vld [vmem:[#allocation8 + $0x1c8] ss:$16 sps:$4 sm:$0xff]  }
 0x171   :  { %2275 = vmatpush2.bf16.msra.mxu1 %v2992_v24  ;;  %2235 = vmatprep.subr.bf16.mxu0 %v2997_v25  ;;  %v3070_v24 = vld [vmem:[#allocation8 + $0x3c8] ss:$16 sps:$4 sm:$0xff]   ;;  %v3075_v25 = vld [vmem:[#allocation8 + $0x1ac] ss:$16 sps:$4 sm:$0xff]  }
 0x172   :  { %2276 = vmatprep.subr.bf16.mxu1 %v3000_v26  ;;  %v3078_v26 = vld [vmem:[#allocation8 + $0x3ac] ss:$16 sps:$4 sm:$0xff]  }
 0x174   :  { %2236 = vmatpush2.bf16.msra.mxu0 %v2995_v28  ;;  %v3076_v28 = vld [vmem:[#allocation8 + $0x3a8] ss:$16 sps:$4 sm:$0xff]  }
 0x175   :  { %2277 = vmatpush2.bf16.msra.mxu1 %v2998_v29  ;;  %2237 = vmatprep.subr.bf16.mxu0 %v3003_v31  ;;  %v3081_v29 = vld [vmem:[#allocation8 + $0x18c] ss:$16 sps:$4 sm:$0xff]   ;;  %v3079_v31 = vld [vmem:[#allocation8 + $0x188] ss:$16 sps:$4 sm:$0xff]  }
 0x176   :  { %2278 = vmatprep.subr.bf16.mxu1 %v3006_v32  ;;  %v3082_v32 = vld [vmem:[#allocation8 + $0x388] ss:$16 sps:$4 sm:$0xff]  }
 0x178   :  { %2238 = vmatpush2.bf16.msra.mxu0 %v3001_v34  ;;  %v3090_v34 = vld [vmem:[#allocation8 + $0x36c] ss:$16 sps:$4 sm:$0xff]  }
 0x179   :  { %2279 = vmatpush2.bf16.msra.mxu1 %v3004_v35  ;;  %2239 = vmatprep.subr.bf16.mxu0 %v3009_v37  ;;  %v3085_v35 = vld [vmem:[#allocation8 + $0x168] ss:$16 sps:$4 sm:$0xff]   ;;  %v3093_v37 = vld [vmem:[#allocation8 + $0x14c] ss:$16 sps:$4 sm:$0xff]  }
 0x17a   :  { %2280 = vmatprep.subr.bf16.mxu1 %v3012_v38  ;;  %v3096_v38 = vld [vmem:[#allocation8 + $0x34c] ss:$16 sps:$4 sm:$0xff]  }
 0x17c   :  { %2240 = vmatpush2.bf16.msra.mxu0 %v3007_v9  ;;  %v3094_v9 = vld [vmem:[#allocation8 + $0x348] ss:$16 sps:$4 sm:$0xff]  }
 0x17d   :  { %2281 = vmatpush2.bf16.msra.mxu1 %v3010_v6  ;;  %2291 = vmatprep.subr.bf16.mxu0 %v3015_v42  ;;  %v3099_v6 = vld [vmem:[#allocation8 + $0x12c] ss:$16 sps:$4 sm:$0xff]   ;;  %v3097_v42 = vld [vmem:[#allocation8 + $0x128] ss:$16 sps:$4 sm:$0xff]  }
 0x17e   :  { %2332 = vmatprep.subr.bf16.mxu1 %v3018_v8  ;;  %v3100_v8 = vld [vmem:[#allocation8 + $0x328] ss:$16 sps:$4 sm:$0xff]  }
 0x17f   :  { %2242 = vmatmul.mubr.bf16.vlgmr.msra.gmra.mxu0 %v3332_v7 }
 0x180   :  { %2283 = vmatmul.mubr.bf16.vlgmr.msra.gmra.mxu1 %v3330_v45  ;;  %2292 = vmatpush1.bf16.msra.mxu0 %v3013_v46  ;;  %v3105_v46 = vld [vmem:[#allocation8 + $0x10c] ss:$16 sps:$4 sm:$0xff]  }
 0x181   :  { %2323 = vmatprep.mubr.bf16.mxu0 %v3316_v33  ;;  %2333 = vmatpush1.bf16.msra.mxu1 %v3016_v47  ;;  %v3034_v33 = vld [vmem:[#allocation8 + $0x288] ss:$16 sps:$4 sm:$0xff]   ;;  %v3108_v47 = vld [vmem:[#allocation8 + $0x30c] ss:$16 sps:$4 sm:$0xff]  }
 0x182   :  { %2364 = vmatprep.mubr.bf16.mxu1 %v3318_v12  ;;  %2293 = vmatprep.subr.bf16.mxu0 %v3021_v48  ;;  %v3042_v12 = vld [vmem:[#allocation8 + $0x26c] ss:$16 sps:$4 sm:$0xff]   ;;  %v3103_v48 = vld [vmem:[#allocation8 + $0x108] ss:$16 sps:$4 sm:$0xff]  }
 0x183   :  { %2334 = vmatprep.subr.bf16.mxu1 %v3024_v49  ;;  %v3106_v49 = vld [vmem:[#allocation8 + $0x308] ss:$16 sps:$4 sm:$0xff]  }
 0x184   :  { %2294 = vmatpush1.bf16.msra.mxu0 %v3019_v50 }
 0x185   :  { %2335 = vmatpush1.bf16.msra.mxu1 %v3022_v51  ;;  %2295 = vmatprep.subr.bf16.mxu0 %v3027_v52 }
 0x186   :  { %2336 = vmatprep.subr.bf16.mxu1 %v3030_v53 }
 0x188   :  { %2296 = vmatpush1.bf16.msra.mxu0 %v3025_v54 }
 0x189   :  { %2337 = vmatpush1.bf16.msra.mxu1 %v3028_v55  ;;  %2297 = vmatprep.subr.bf16.mxu0 %v3033_v56 }
 0x18a   :  { %2338 = vmatprep.subr.bf16.mxu1 %v3036_v57 }
 0x18c   :  { %2298 = vmatpush1.bf16.msra.mxu0 %v3031_v58  ;;  %v514_v58 = vld [vmem:[%s3378_s4] sm:$0xf] }
 0x18d   :  { %2339 = vmatpush1.bf16.msra.mxu1 %v3034_v33  ;;  %2299 = vmatprep.subr.bf16.mxu0 %v3039_v59  ;;  %v523_v33 = vrot.slane %v514_v58, %v3283_v43  ;;  %v519_v59 = vrot.slane %v514_v58, %v3276_v40 }
 0x18e   :  { %2340 = vmatprep.subr.bf16.mxu1 %v3042_v12 }
 0x190   :  { %2300 = vmatpush1.bf16.msra.mxu0 %v3037_v60 }
 0x191   :  { %2341 = vmatpush1.bf16.msra.mxu1 %v3040_v61  ;;  %2301 = vmatprep.subr.bf16.mxu0 %v3045_v62  ;;  %v1344_v62 = vld [vmem:[%s3379_s5] sm:$0xf] }
 0x192   :  { %2342 = vmatprep.subr.bf16.mxu1 %v3048_v0 }
 0x194   :  { %2302 = vmatpush1.bf16.msra.mxu0 %v3043_v1  ;;  %v1353_v1 = vrot.slane %v1344_v62, %v3283_v43 }
 0x195   :  { %2343 = vmatpush1.bf16.msra.mxu1 %v3046_v2  ;;  %2303 = vmatprep.subr.bf16.mxu0 %v3051_v3  ;;  %v531_v2 = vrot.slane %v514_v58, %v3285_v44 }
 0x196   :  { %2344 = vmatprep.subr.bf16.mxu1 %v3054_v4 }
 0x198   :  { %2304 = vmatpush1.bf16.msra.mxu0 %v3049_v5 }
 0x199   :  { %2345 = vmatpush1.bf16.msra.mxu1 %v3052_v10  ;;  %2305 = vmatprep.subr.bf16.mxu0 %v3057_v13  ;;  %v1349_v10 = vrot.slane %v1344_v62, %v3276_v40 }
 0x19a   :  { %2346 = vmatprep.subr.bf16.mxu1 %v3060_v14 }
 0x19c   :  { %2306 = vmatpush1.bf16.msra.mxu0 %v3055_v15 }
 0x19d   :  { %2347 = vmatpush1.bf16.msra.mxu1 %v3058_v16  ;;  %2307 = vmatprep.subr.bf16.mxu0 %v3063_v17 }
 0x19e   :  { %2348 = vmatprep.subr.bf16.mxu1 %v3066_v18  ;;  %v1357_v18 = vrot.slane %v1344_v62, %v3278_v41 }
 0x1a0   :  { %2308 = vmatpush2.bf16.msra.mxu0 %v3061_v19 }
 0x1a1   :  { %2349 = vmatpush2.bf16.msra.mxu1 %v3064_v20  ;;  %2309 = vmatprep.subr.bf16.mxu0 %v3069_v21 }
 0x1a2   :  { %2350 = vmatprep.subr.bf16.mxu1 %v3072_v22 }
 0x1a4   :  { %2310 = vmatpush2.bf16.msra.mxu0 %v3067_v23 }
 0x1a5   :  { %2351 = vmatpush2.bf16.msra.mxu1 %v3070_v24  ;;  %2311 = vmatprep.subr.bf16.mxu0 %v3075_v25  ;;  %v1361_v25 = vrot.slane %v1344_v62, %v3285_v44 }
 0x1a6   :  { %2352 = vmatprep.subr.bf16.mxu1 %v3078_v26 }
 0x1a8   :  { %2312 = vmatpush2.bf16.msra.mxu0 %v3073_v27 }
 0x1a9   :  { %2353 = vmatpush2.bf16.msra.mxu1 %v3076_v28  ;;  %2313 = vmatprep.subr.bf16.mxu0 %v3081_v29 }
 0x1aa   :  { %2354 = vmatprep.subr.bf16.mxu1 %v3084_v30 }
 0x1ac   :  { %2314 = vmatpush2.bf16.msra.mxu0 %v3079_v31 }
 0x1ad   :  { %2355 = vmatpush2.bf16.msra.mxu1 %v3082_v32  ;;  %2315 = vmatprep.subr.bf16.mxu0 %v3087_v11 }
 0x1ae   :  { %2356 = vmatprep.subr.bf16.mxu1 %v3090_v34 }
 0x1b0   :  { %2316 = vmatpush2.bf16.msra.mxu0 %v3085_v35 }
 0x1b1   :  { %2357 = vmatpush2.bf16.msra.mxu1 %v3088_v36  ;;  %2317 = vmatprep.subr.bf16.mxu0 %v3093_v37 }
 0x1b2   :  { %2358 = vmatprep.subr.bf16.mxu1 %v3096_v38 }
 0x1b4   :  { %2318 = vmatpush2.bf16.msra.mxu0 %v3091_v39 }
 0x1b5   :  { %2359 = vmatpush2.bf16.msra.mxu1 %v3094_v9  ;;  %2319 = vmatprep.subr.bf16.mxu0 %v3099_v6 }
 0x1b6   :  { %2360 = vmatprep.subr.bf16.mxu1 %v3102_v63  ;;  %v1547_v63 = vld [vmem:[%s3382_s8] sm:$0xf] }
 0x1b8   :  { %2320 = vmatpush2.bf16.msra.mxu0 %v3097_v42  ;;  %v1556_v42 = vrot.slane %v1547_v63, %v3283_v43 }
 0x1b9   :  { %2361 = vmatpush2.bf16.msra.mxu1 %v3100_v8  ;;  %2321 = vmatprep.subr.bf16.mxu0 %v3105_v46  ;;  %v1552_v8 = vrot.slane %v1547_v63, %v3276_v40 }
 0x1ba   :  { %2362 = vmatprep.subr.bf16.mxu1 %v3108_v47 }
 0x1bc   :  { %2322 = vmatpush2.bf16.msra.mxu0 %v3103_v48 }
 0x1bd   :  { %2363 = vmatpush2.bf16.msra.mxu1 %v3106_v49 }
 0x1bf   :  { %2324 = vmatmul.mubr.bf16.vlgmr.msra.gmra.mxu0 %v3332_v7  ;;  %v1210_v50 = vpop.f32.mrf.mxu0 }
 0x1c0   :  { %v1251_v51 = vpop.f32.mrf.mxu1  ;;  %2365 = vmatmul.mubr.bf16.vlgmr.msra.gmra.mxu1 %v3330_v45  ;;  %v1211_v7 = vadd.f32 %v1210_v50, %v519_v59  ;;  %v527_v45 = vrot.slane %v514_v58, %v3278_v41  ;;  %v1560_v50 = vrot.slane %v1547_v63, %v3278_v41 }
 0x1c1   :  { %v1212_v52 = vpop.f32.mrf.mxu0 }
 0x1c2   :  { %v1253_v53 = vpop.f32.mrf.mxu1  ;;  %v1213_v12 = vadd.f32 %v1212_v52, %v523_v33  ;;  %v1252_v61 = vadd.f32 %v1251_v51, %v1211_v7  ;;  %v2377_v51 = vld [vmem:[%s3383_s9] sm:$0xf] }
 0x1c3   :  { %v1214_v54 = vpop.f32.mrf.mxu0 }
 0x1c4   :  { %v1255_v55 = vpop.f32.mrf.mxu1  ;;  %v1254_v60 = vadd.f32 %v1253_v53, %v1213_v12  ;;  %v1340_v5 = vmax.f32 %v1252_v61, 0.0  ;;  %v2386_v53 = vrot.slane %v2377_v51, %v3283_v43  ;;  %v1564_v54 = vrot.slane %v1547_v63, %v3285_v44 }
 0x1c5   :  { %v1215_v56 = vpop.f32.mrf.mxu0  ;;  %v2394_v43 = vrot.slane %v2377_v51, %v3285_v44 }
 0x1c6   :  { %v1256_v57 = vpop.f32.mrf.mxu1  ;;  %v1341_v0 = vmax.f32 %v1254_v60, 0.0  ;;  %v1366_v22 = vmul.f32 %v1349_v10, %v1340_v5  ;;  %v2390_v60 = vrot.slane %v2377_v51, %v3278_v41 }
 0x1c7   :  { %v2382_v57 = vrot.slane %v2377_v51, %v3276_v40 }
 0x1c8   :  { %v1367_v16 = vmul.f32 %v1353_v1, %v1341_v0 }
 0x1ca   :  { %v1370_v30 = vadd.f32 %v1367_v16, %v1366_v22 }
 0x1ff   :  { %v1292_v3 = vpop.f32.mrf.mxu0 }
 0x200   :  { %v1333_v4 = vpop.f32.mrf.mxu1  ;;  %v1293_v13 = vadd.f32 %v1292_v3, %v527_v45 }
 0x201   :  { %v1294_v14 = vpop.f32.mrf.mxu0 }
 0x202   :  { %v1335_v15 = vpop.f32.mrf.mxu1  ;;  %v1334_v17 = vadd.f32 %v1333_v4, %v1293_v13  ;;  %v1295_v19 = vadd.f32 %v1294_v14, %v531_v2 }
 0x203   :  { %v1296_v20 = vpop.f32.mrf.mxu0 }
 0x204   :  { %v1337_v21 = vpop.f32.mrf.mxu1  ;;  %v1342_v23 = vmax.f32 %v1334_v17, 0.0  ;;  %v1336_v24 = vadd.f32 %v1335_v15, %v1295_v19  ;;  %v2579_v17 = vld [vmem:[#allocation2] ss:$0 sm:$0xff]  ;;  %v2708_v19 = vld [vmem:[#allocation3] ss:$0 sm:$0xff] }
 0x205   :  { %v1297_v26 = vpop.f32.mrf.mxu0 }
 0x206   :  { %v1338_v27 = vpop.f32.mrf.mxu1  ;;  %v1368_v28 = vmul.f32 %v1357_v18, %v1342_v23  ;;  %v1343_v29 = vmax.f32 %v1336_v24, 0.0 }
 0x208   :  { %v1369_v31 = vmul.f32 %v1361_v25, %v1343_v29  ;;  %v1371_v32 = vadd.f32 %v1370_v30, %v1368_v28 }
 0x20a   :  { %v1372_v11 = vadd.f32 %v1371_v32, %v1369_v31 }
 0x20c   :  { %1373 = vadd.xlane.f32.xlu0 %v1372_v11 }
 0x23f   :  { %v2243_v34 = vpop.f32.mrf.mxu0 }
 0x240   :  { %v2284_v35 = vpop.f32.mrf.mxu1  ;;  %v2244_v47 = vadd.f32 %v2243_v34, %v1552_v8 }
 0x241   :  { %v2245_v36 = vpop.f32.mrf.mxu0 }
 0x242   :  { %v2286_v37 = vpop.f32.mrf.mxu1  ;;  %v2246_v46 = vadd.f32 %v2245_v36, %v1556_v42  ;;  %v2285_v49 = vadd.f32 %v2284_v35, %v2244_v47 }
 0x243   :  { %v2247_v38 = vpop.f32.mrf.mxu0 }
 0x244   :  { %v2288_v39 = vpop.f32.mrf.mxu1  ;;  %v2287_v48 = vadd.f32 %v2286_v37, %v2246_v46  ;;  %v2373_v56 = vmax.f32 %v2285_v49, 0.0 }
 0x245   :  { %v2248_v9 = vpop.f32.mrf.mxu0 }
 0x246   :  { %v2289_v6 = vpop.f32.mrf.mxu1  ;;  %v2374_v52 = vmax.f32 %v2287_v48, 0.0  ;;  %v2399_v0 = vmul.f32 %v2382_v57, %v2373_v56 }
 0x248   :  { %v2400_v12 = vmul.f32 %v2386_v53, %v2374_v52 }
 0x24a   :  { %v2403_v5 = vadd.f32 %v2400_v12, %v2399_v0 }
 0x27f   :  { %v2325_v55 = vpop.f32.mrf.mxu0 }
 0x280   :  { %v2326_v58 = vadd.f32 %v2325_v55, %v1560_v50  ;;  %v2366_v33 = vpop.f32.mrf.mxu1 }
 0x281   :  { %v2327_v59 = vpop.f32.mrf.mxu0 }
 0x282   :  { %v2367_v7 = vadd.f32 %v2366_v33, %v2326_v58  ;;  %v2328_v61 = vadd.f32 %v2327_v59, %v1564_v54  ;;  %v2368_v45 = vpop.f32.mrf.mxu1 }
 0x283   :  { %v2329_v62 = vpop.f32.mrf.mxu0 }
 0x284   :  { %v2375_v1 = vmax.f32 %v2367_v7, 0.0  ;;  %v2369_v2 = vadd.f32 %v2368_v45, %v2328_v61  ;;  %v2370_v3 = vpop.f32.mrf.mxu1 }
 0x285   :  { %v2330_v4 = vpop.f32.mrf.mxu0 }
 0x286   :  { %v2401_v10 = vmul.f32 %v2390_v60, %v2375_v1  ;;  %v2376_v40 = vmax.f32 %v2369_v2, 0.0  ;;  %v2371_v13 = vpop.f32.mrf.mxu1 }
 0x288   :  { %v2402_v14 = vmul.f32 %v2394_v43, %v2376_v40  ;;  %v2404_v15 = vadd.f32 %v2403_v5, %v2401_v10 }
 0x28a   :  { %v2405_v16 = vadd.f32 %v2404_v15, %v2402_v14 }
 0x28c   :  { %2406 = vadd.xlane.f32.xlu0 %v2405_v16 }
 0x295   :  { %v1374_v41 = vpop.xlane.xlu0 %1373 }
 0x296   :  { %v1382_v18 = vadd.f32 %v2579_v17, %v1374_v41 }
 0x298   :  { %1384 = vst.msk [vmem:[%s3384_s11] sm:$0xff] %vm1383_vm2, %v1382_v18 }
 0x315   :  { %v2407_v44 = vpop.xlane.xlu0 %2406 }
 0x316   :  { %v2415_v20 = vadd.f32 %v2708_v19, %v2407_v44 }
 0x318   :  { %2416 = vst.msk [vmem:[%s3385_s12] sm:$0xff] %vm1383_vm2, %v2415_v20 }
 0x319   :  { %2425 = vsyncpa [#allocation5], 1 }
 0x31a   :  { %2426 = vsyncpa [#allocation7], 1 }

</bundles_post_ra>
